<compile_context>
chip_gen: v7x
topology: tpu7x:2x2x1
jax: 0.10.0
libtpu: 0.0.40
codegen_flags: <defaults>
</compile_context>

<pallas_src>
import functools

import jax
import jax.numpy as jnp
from jax import lax
from jax.experimental import pallas as pl
from jax.experimental.pallas import tpu as pltpu


# ----------------------------- fused kernel ----------------------------------


def _fused_attention_mlp_kernel(x_ref, wqkv_ref, bqkv_ref, prep_ref,
                                w1_ref, b1_ref, w2_ref, b2_ref, out_ref,
                                *, num_heads, use_mask):
  """Fused qkv projection + multi-head attention + (LoRA-merged) MLP + residual.

  Single grid step; x_ref is the whole (B*S, C) batch slab.
  prep_ref is (B*S, B*S): additive 0/-inf bias (masked path) or 0/1 same-batch
  multiplicative mask (raw-score path).
  """
  x = x_ref[...]                                    # (BS, C)
  BS, C = x.shape
  hd = C // num_heads

  # Packed q/k/v projection: one (BS,C)x(C,3C) MXU stream. Attention scale is
  # already folded into the q columns of wqkv/bqkv.
  qkv = jnp.dot(x, wqkv_ref[...], preferred_element_type=jnp.float32) + bqkv_ref[...]
  q = qkv[:, :C]
  k = qkv[:, C:2 * C]
  v = qkv[:, 2 * C:]

  prep = prep_ref[...]                              # (BS, BS)

  # Contract last dim of both operands: q_h @ k_h^T without materializing k.T.
  dn = (((1,), (1,)), ((), ()))

  head_outs = []
  for h in range(num_heads):
    sl = slice(h * hd, (h + 1) * hd)
    s = lax.dot_general(q[:, sl], k[:, sl], dn,
                        preferred_element_type=jnp.float32)          # (BS, BS) f32
    if use_mask:
      s = s + prep                                   # masked / cross-batch keys -> -inf
      m = jnp.max(s, axis=-1, keepdims=True)
      m = jnp.where(m > -jnp.inf, m, jnp.float32(0.0))               # fully-masked row guard
      e = jnp.exp(s - m)                                             # masked entries -> 0
      l = jnp.sum(e, axis=-1, keepdims=True)
      inv = jnp.where(l > 0.0, pl.reciprocal(l, approx=True), jnp.float32(0.0))
      attn = e * inv                                 # fully-masked row -> all zeros (torch nan->0)
    else:
      attn = s * prep                                # raw scores (no softmax), cross-batch zeroed
    head_outs.append(jnp.dot(attn, v[:, sl], preferred_element_type=jnp.float32))

  x_attn = jnp.concatenate(head_outs, axis=-1)       # (BS, C), stays in registers

  # MLP (shared LoRA already merged into w1/w2 at parameter-prep time).
  h1 = jnp.dot(x_attn, w1_ref[...], preferred_element_type=jnp.float32) + b1_ref[...]
  # exact (erf-based) GELU, matching nn.GELU() default
  h1 = 0.5 * h1 * (1.0 + lax.erf(h1 * jnp.float32(0.7071067811865476)))
  y = jnp.dot(h1, w2_ref[...], preferred_element_type=jnp.float32) + b2_ref[...]

  out_ref[...] = x_attn + y                          # residual: x_out + mlp(x_out)


# ----------------------------- parameters ------------------------------------


def make_params(key, dim, num_heads, mlp_hidden, r):
  ks = jax.random.split(key, 14)
  n = lambda k, shape: (0.02 * jax.random.normal(k, shape)).astype(jnp.float32)
  return dict(
      num_heads=num_heads,
      lora_shared_scale=1.0,
      r=r,
      # q/k/v linear weights stored transposed (in, out); biases as (1, out)
      wq_t=n(ks[0], (dim, dim)), bq=n(ks[1], (1, dim)),
      wk_t=n(ks[2], (dim, dim)), bk=n(ks[3], (1, dim)),
      wv_t=n(ks[4], (dim, dim)), bv=n(ks[5], (1, dim)),
      # Mlp fc1 / fc2 (base weights + shared LoRA A^T, B^T)
      w1_t=n(ks[6], (dim, mlp_hidden)), b1=n(ks[7], (1, mlp_hidden)),
      a1_t=n(ks[8], (dim, r)), bl1_t=n(ks[9], (r, mlp_hidden)),
      w2_t=n(ks[10], (mlp_hidden, dim)), b2=n(ks[11], (1, dim)),
      a2_t=n(ks[12], (mlp_hidden, r)), bl2_t=n(ks[13], (r, dim)),
  )


def prepare_params(params, dim, num_heads):
  """One-time weight prep (hoisted out of the forward): pack qkv (scale folded
  into q), merge shared LoRA into the MLP base weights."""
  hd = dim // num_heads
  scale = jnp.float32(float(hd) ** -0.5)
  wqkv_t = jnp.concatenate([params['wq_t'] * scale, params['wk_t'], params['wv_t']], axis=1)
  bqkv = jnp.concatenate([params['bq'] * scale, params['bk'], params['bv']], axis=1)
  s = params['lora_shared_scale']
  w1_eff = params['w1_t'] + s * (params['a1_t'] @ params['bl1_t'])
  w2_eff = params['w2_t'] + s * (params['a2_t'] @ params['bl2_t'])
  return dict(num_heads=num_heads,
              wqkv_t=wqkv_t, bqkv=bqkv,
              w1_eff=w1_eff, b1=params['b1'],
              w2_eff=w2_eff, b2=params['b2'])


# ----------------------------- wrapper ----------------------------------------


def attention_forward(x, prep, mask_modality='a', xs=None, mask=None):
  """JAX/Pallas equivalent of Attention.forward. Returns (x_out, xs)."""
  x = x.astype(jnp.float32)
  B, S, C = x.shape
  H = prep['num_heads']
  use_mask = mask is not None
  BS = B * S
  hidden = prep['w1_eff'].shape[1]

  # Precomputed (BS, BS) attention prep matrix (keeps all compare/select out of the kernel):
  #  - same-batch block indicator keeps the folded batch dim block-diagonal.
  row_b = jnp.arange(BS, dtype=jnp.int32) // S
  same_batch = row_b[:, None] == row_b[None, :]
  if use_mask:
    off = {'a': 0, 't': 1, 'v': 2}[mask_modality]
    keep = mask[:, off * S:(off + 1) * S].astype(bool).reshape(BS)   # True = attend (torch ~mask)
    allowed = same_batch & keep[None, :]
    attn_prep = jnp.where(allowed, 0.0, -jnp.inf).astype(jnp.float32)     # additive bias
  else:
    attn_prep = same_batch.astype(jnp.float32)                            # multiplicative 0/1

  full = lambda a: pl.BlockSpec(a.shape, lambda i: (0,) * a.ndim)

  x2d = x.reshape(BS, C)
  inputs = [x2d, prep['wqkv_t'], prep['bqkv'], attn_prep,
            prep['w1_eff'], prep['b1'], prep['w2_eff'], prep['b2']]

  fused_fn = pl.pallas_call(
      functools.partial(_fused_attention_mlp_kernel, num_heads=H, use_mask=use_mask),
      out_shape=jax.ShapeDtypeStruct((BS, C), jnp.float32),
      grid=(1,),
      in_specs=[full(a) for a in inputs],
      out_specs=pl.BlockSpec((BS, C), lambda i: (0, 0)),
      compiler_params=pltpu.CompilerParams(dimension_semantics=("arbitrary",)),
  )
  out2d = fused_fn(*inputs)
  # TODO(synk): per-task xs outputs from MCULoRALinear not modelled (no source); pass None.
  return out2d.reshape(B, S, C), None


# ----------------------------- pure-JAX reference ------------------------------


def reference_forward(x, params, num_heads, mask_modality='a', mask=None):
  B, S, C = x.shape
  H = num_heads
  hd = C // H
  scale = float(hd) ** -0.5
  proj = lambda w, b: (x @ w + b).reshape(B, S, H, hd).transpose(0, 2, 1, 3)
  q = proj(params['wq_t'], params['bq']) * scale
  k = proj(params['wk_t'], params['bk'])
  v = proj(params['wv_t'], params['bv'])
  attn = jnp.einsum('bhid,bhjd->bhij', q, k)
  if mask is not None:
    off = {'a': 0, 't': 1, 'v': 2}[mask_modality]
    m = mask[:, off * S:(off + 1) * S].astype(bool)
    attn = jnp.where(m[:, None, None, :], attn, -jnp.inf)
    attn = jax.nn.softmax(attn, axis=-1)
    attn = jnp.where(jnp.isnan(attn), 0.0, attn)
  x_out = jnp.einsum('bhij,bhjd->bhid', attn, v).transpose(0, 2, 1, 3).reshape(B, S, C)
  s = params['lora_shared_scale']
  w1 = params['w1_t'] + s * (params['a1_t'] @ params['bl1_t'])
  w2 = params['w2_t'] + s * (params['a2_t'] @ params['bl2_t'])
  h1 = x_out @ w1 + params['b1']
  h1 = 0.5 * h1 * (1.0 + lax.erf(h1 / jnp.sqrt(2.0)))
  y = h1 @ w2 + params['b2']
  return x_out + y


# ----------------------------- main --------------------------------------------


if __name__ == "__main__":
  B, S, C = 2, 8, 32
  num_heads = 8
  mlp_ratio = 1.0
  r = 8
  mlp_hidden = int(C * mlp_ratio)

  key = jax.random.PRNGKey(0)
  k_param, k_x, k_mask = jax.random.split(key, 3)

  params = make_params(k_param, C, num_heads, mlp_hidden, r)
  prep = prepare_params(params, C, num_heads)            # one-time weight prep (hoisted)
  x = jax.random.normal(k_x, (B, S, C), dtype=jnp.float32)
  # mask covers 3 modalities concatenated along the key axis: (B, 3*S) bool
  mask = jax.random.bernoulli(k_mask, 0.7, (B, 3 * S))

  # masked path (softmax branch)
  out_masked, xs = attention_forward(x, prep, mask_modality='a', mask=mask)
  out_masked = jax.block_until_ready(out_masked)

  # unmasked path (raw-score branch, exactly as the PyTorch code when mask is None)
  out_plain, xs = attention_forward(x, prep, mask_modality='a', mask=None)
  out_plain = jax.block_until_ready(out_plain)

  assert out_masked.shape == (B, S, C) and out_plain.shape == (B, S, C)
  assert bool(jnp.all(jnp.isfinite(out_masked))) and bool(jnp.all(jnp.isfinite(out_plain)))

  # numerical check against pure-JAX reference (loose tol: kernel uses approx reciprocal)
  ref_masked = reference_forward(x, params, num_heads, mask_modality='a', mask=mask)
  ref_plain = reference_forward(x, params, num_heads, mask_modality='a', mask=None)
  assert bool(jnp.allclose(out_masked, ref_masked, atol=2e-2, rtol=2e-2))
  assert bool(jnp.allclose(out_plain, ref_plain, atol=2e-2, rtol=2e-2))

  print("KERNEL_OK")
</pallas_src>

<mosaic_0001>
module attributes {stable_mosaic.version = 11 : i64} {
  func.func @_fused_attention_mlp_kernel(%arg0: i32, %arg1: memref<16x32xf32, #tpu.memory_space<vmem>>, %arg2: memref<32x96xf32, #tpu.memory_space<vmem>>, %arg3: memref<1x96xf32, #tpu.memory_space<vmem>>, %arg4: memref<16x16xf32, #tpu.memory_space<vmem>>, %arg5: memref<32x32xf32, #tpu.memory_space<vmem>>, %arg6: memref<1x32xf32, #tpu.memory_space<vmem>>, %arg7: memref<32x32xf32, #tpu.memory_space<vmem>>, %arg8: memref<1x32xf32, #tpu.memory_space<vmem>>, %arg9: memref<16x32xf32, #tpu.memory_space<vmem>>) attributes {dimension_semantics = [#tpu.dimension_semantics<arbitrary>], iteration_bounds = array<i64: 1>, scalar_prefetch = 0 : i64, scratch_operands = 0 : i64, tpu.core_type = #tpu.core_type<tc>, window_params = [{pipeline_mode = #tpu.pipeline_mode<synchronous>, transform_indices = @transform_0, window_bounds = array<i64: 16, 32>}, {pipeline_mode = #tpu.pipeline_mode<synchronous>, transform_indices = @transform_1, window_bounds = array<i64: 32, 96>}, {pipeline_mode = #tpu.pipeline_mode<synchronous>, transform_indices = @transform_2, window_bounds = array<i64: 1, 96>}, {pipeline_mode = #tpu.pipeline_mode<synchronous>, transform_indices = @transform_3, window_bounds = array<i64: 16, 16>}, {pipeline_mode = #tpu.pipeline_mode<synchronous>, transform_indices = @transform_4, window_bounds = array<i64: 32, 32>}, {pipeline_mode = #tpu.pipeline_mode<synchronous>, transform_indices = @transform_5, window_bounds = array<i64: 1, 32>}, {pipeline_mode = #tpu.pipeline_mode<synchronous>, transform_indices = @transform_6, window_bounds = array<i64: 32, 32>}, {pipeline_mode = #tpu.pipeline_mode<synchronous>, transform_indices = @transform_7, window_bounds = array<i64: 1, 32>}, {pipeline_mode = #tpu.pipeline_mode<synchronous>, transform_indices = @transform_8, window_bounds = array<i64: 16, 32>}]} {
    %c0 = arith.constant 0 : index
    %c0_0 = arith.constant 0 : index
    %0 = vector.load %arg1[%c0, %c0_0] : memref<16x32xf32, #tpu.memory_space<vmem>>, vector<16x32xf32>
    %c0_1 = arith.constant 0 : index
    %c0_2 = arith.constant 0 : index
    %1 = vector.load %arg2[%c0_1, %c0_2] : memref<32x96xf32, #tpu.memory_space<vmem>>, vector<32x96xf32>
    %cst = arith.constant dense<0.000000e+00> : vector<16x96xf32>
    %2 = tpu.matmul %0, %1, %cst {dimension_numbers = #tpu.dot_dimension_numbers<[1], [0], [0], [1], [0, 0, 1, 1], [], []>} : vector<16x32xf32>, vector<32x96xf32>, vector<16x96xf32> -> vector<16x96xf32>
    %c0_3 = arith.constant 0 : index
    %c0_4 = arith.constant 0 : index
    %3 = vector.load %arg3[%c0_3, %c0_4] : memref<1x96xf32, #tpu.memory_space<vmem>>, vector<1x96xf32>
    %4 = vector.broadcast %3 : vector<1x96xf32> to vector<16x96xf32>
    %5 = arith.addf %2, %4 : vector<16x96xf32>
    %6 = vector.extract_strided_slice %5 {offsets = [0, 0], sizes = [16, 32], strides = [1, 1]} : vector<16x96xf32> to vector<16x32xf32>
    %7 = vector.extract_strided_slice %5 {offsets = [0, 32], sizes = [16, 32], strides = [1, 1]} : vector<16x96xf32> to vector<16x32xf32>
    %8 = vector.extract_strided_slice %5 {offsets = [0, 64], sizes = [16, 32], strides = [1, 1]} : vector<16x96xf32> to vector<16x32xf32>
    %c0_5 = arith.constant 0 : index
    %c0_6 = arith.constant 0 : index
    %9 = vector.load %arg4[%c0_5, %c0_6] : memref<16x16xf32, #tpu.memory_space<vmem>>, vector<16x16xf32>
    %10 = vector.extract_strided_slice %6 {offsets = [0, 0], sizes = [16, 4], strides = [1, 1]} : vector<16x32xf32> to vector<16x4xf32>
    %11 = vector.extract_strided_slice %7 {offsets = [0, 0], sizes = [16, 4], strides = [1, 1]} : vector<16x32xf32> to vector<16x4xf32>
    %cst_7 = arith.constant dense<0.000000e+00> : vector<16x16xf32>
    %12 = tpu.matmul %10, %11, %cst_7 {dimension_numbers = #tpu.dot_dimension_numbers<[1], [1], [0], [0], [0, 0, 1, 0], [], []>} : vector<16x4xf32>, vector<16x4xf32>, vector<16x16xf32> -> vector<16x16xf32>
    %13 = arith.addf %12, %9 : vector<16x16xf32>
    %cst_8 = arith.constant dense<0xFF800000> : vector<16xf32>
    %14 = vector.multi_reduction <maximumf>, %13, %cst_8 [1] : vector<16x16xf32> to vector<16xf32>
    %15 = vector.shape_cast %14 : vector<16xf32> to vector<16x1xf32>
    %cst_9 = arith.constant 0xFF800000 : f32
    %16 = vector.broadcast %cst_9 : f32 to vector<16x1xf32>
    %17 = arith.cmpf ogt, %15, %16 : vector<16x1xf32>
    %cst_10 = arith.constant 0.000000e+00 : f32
    %18 = vector.broadcast %cst_10 : f32 to vector<16x1xf32>
    %19 = arith.select %17, %15, %18 : vector<16x1xi1>, vector<16x1xf32>
    %20 = vector.broadcast %19 : vector<16x1xf32> to vector<16x16xf32>
    %21 = arith.subf %13, %20 : vector<16x16xf32>
    %22 = math.exp %21 : vector<16x16xf32>
    %cst_11 = arith.constant dense<0.000000e+00> : vector<16xf32>
    %23 = vector.multi_reduction <add>, %22, %cst_11 [1] : vector<16x16xf32> to vector<16xf32>
    %24 = vector.shape_cast %23 : vector<16xf32> to vector<16x1xf32>
    %cst_12 = arith.constant 0.000000e+00 : f32
    %25 = vector.broadcast %cst_12 : f32 to vector<16x1xf32>
    %26 = arith.cmpf ogt, %24, %25 : vector<16x1xf32>
    %27 = tpu.reciprocal %24 {approx = true} : vector<16x1xf32> -> vector<16x1xf32>
    %cst_13 = arith.constant 0.000000e+00 : f32
    %28 = vector.broadcast %cst_13 : f32 to vector<16x1xf32>
    %29 = arith.select %26, %27, %28 : vector<16x1xi1>, vector<16x1xf32>
    %30 = vector.broadcast %29 : vector<16x1xf32> to vector<16x16xf32>
    %31 = arith.mulf %22, %30 : vector<16x16xf32>
    %32 = vector.extract_strided_slice %8 {offsets = [0, 0], sizes = [16, 4], strides = [1, 1]} : vector<16x32xf32> to vector<16x4xf32>
    %cst_14 = arith.constant dense<0.000000e+00> : vector<16x4xf32>
    %33 = tpu.matmul %31, %32, %cst_14 {dimension_numbers = #tpu.dot_dimension_numbers<[1], [0], [0], [1], [0, 0, 1, 1], [], []>} : vector<16x16xf32>, vector<16x4xf32>, vector<16x4xf32> -> vector<16x4xf32>
    %34 = vector.extract_strided_slice %6 {offsets = [0, 4], sizes = [16, 4], strides = [1, 1]} : vector<16x32xf32> to vector<16x4xf32>
    %35 = vector.extract_strided_slice %7 {offsets = [0, 4], sizes = [16, 4], strides = [1, 1]} : vector<16x32xf32> to vector<16x4xf32>
    %cst_15 = arith.constant dense<0.000000e+00> : vector<16x16xf32>
    %36 = tpu.matmul %34, %35, %cst_15 {dimension_numbers = #tpu.dot_dimension_numbers<[1], [1], [0], [0], [0, 0, 1, 0], [], []>} : vector<16x4xf32>, vector<16x4xf32>, vector<16x16xf32> -> vector<16x16xf32>
    %37 = arith.addf %36, %9 : vector<16x16xf32>
    %cst_16 = arith.constant dense<0xFF800000> : vector<16xf32>
    %38 = vector.multi_reduction <maximumf>, %37, %cst_16 [1] : vector<16x16xf32> to vector<16xf32>
    %39 = vector.shape_cast %38 : vector<16xf32> to vector<16x1xf32>
    %cst_17 = arith.constant 0xFF800000 : f32
    %40 = vector.broadcast %cst_17 : f32 to vector<16x1xf32>
    %41 = arith.cmpf ogt, %39, %40 : vector<16x1xf32>
    %cst_18 = arith.constant 0.000000e+00 : f32
    %42 = vector.broadcast %cst_18 : f32 to vector<16x1xf32>
    %43 = arith.select %41, %39, %42 : vector<16x1xi1>, vector<16x1xf32>
    %44 = vector.broadcast %43 : vector<16x1xf32> to vector<16x16xf32>
    %45 = arith.subf %37, %44 : vector<16x16xf32>
    %46 = math.exp %45 : vector<16x16xf32>
    %cst_19 = arith.constant dense<0.000000e+00> : vector<16xf32>
    %47 = vector.multi_reduction <add>, %46, %cst_19 [1] : vector<16x16xf32> to vector<16xf32>
    %48 = vector.shape_cast %47 : vector<16xf32> to vector<16x1xf32>
    %cst_20 = arith.constant 0.000000e+00 : f32
    %49 = vector.broadcast %cst_20 : f32 to vector<16x1xf32>
    %50 = arith.cmpf ogt, %48, %49 : vector<16x1xf32>
    %51 = tpu.reciprocal %48 {approx = true} : vector<16x1xf32> -> vector<16x1xf32>
    %cst_21 = arith.constant 0.000000e+00 : f32
    %52 = vector.broadcast %cst_21 : f32 to vector<16x1xf32>
    %53 = arith.select %50, %51, %52 : vector<16x1xi1>, vector<16x1xf32>
    %54 = vector.broadcast %53 : vector<16x1xf32> to vector<16x16xf32>
    %55 = arith.mulf %46, %54 : vector<16x16xf32>
    %56 = vector.extract_strided_slice %8 {offsets = [0, 4], sizes = [16, 4], strides = [1, 1]} : vector<16x32xf32> to vector<16x4xf32>
    %cst_22 = arith.constant dense<0.000000e+00> : vector<16x4xf32>
    %57 = tpu.matmul %55, %56, %cst_22 {dimension_numbers = #tpu.dot_dimension_numbers<[1], [0], [0], [1], [0, 0, 1, 1], [], []>} : vector<16x16xf32>, vector<16x4xf32>, vector<16x4xf32> -> vector<16x4xf32>
    %58 = vector.extract_strided_slice %6 {offsets = [0, 8], sizes = [16, 4], strides = [1, 1]} : vector<16x32xf32> to vector<16x4xf32>
    %59 = vector.extract_strided_slice %7 {offsets = [0, 8], sizes = [16, 4], strides = [1, 1]} : vector<16x32xf32> to vector<16x4xf32>
    %cst_23 = arith.constant dense<0.000000e+00> : vector<16x16xf32>
    %60 = tpu.matmul %58, %59, %cst_23 {dimension_numbers = #tpu.dot_dimension_numbers<[1], [1], [0], [0], [0, 0, 1, 0], [], []>} : vector<16x4xf32>, vector<16x4xf32>, vector<16x16xf32> -> vector<16x16xf32>
    %61 = arith.addf %60, %9 : vector<16x16xf32>
    %cst_24 = arith.constant dense<0xFF800000> : vector<16xf32>
    %62 = vector.multi_reduction <maximumf>, %61, %cst_24 [1] : vector<16x16xf32> to vector<16xf32>
    %63 = vector.shape_cast %62 : vector<16xf32> to vector<16x1xf32>
    %cst_25 = arith.constant 0xFF800000 : f32
    %64 = vector.broadcast %cst_25 : f32 to vector<16x1xf32>
    %65 = arith.cmpf ogt, %63, %64 : vector<16x1xf32>
    %cst_26 = arith.constant 0.000000e+00 : f32
    %66 = vector.broadcast %cst_26 : f32 to vector<16x1xf32>
    %67 = arith.select %65, %63, %66 : vector<16x1xi1>, vector<16x1xf32>
    %68 = vector.broadcast %67 : vector<16x1xf32> to vector<16x16xf32>
    %69 = arith.subf %61, %68 : vector<16x16xf32>
    %70 = math.exp %69 : vector<16x16xf32>
    %cst_27 = arith.constant dense<0.000000e+00> : vector<16xf32>
    %71 = vector.multi_reduction <add>, %70, %cst_27 [1] : vector<16x16xf32> to vector<16xf32>
    %72 = vector.shape_cast %71 : vector<16xf32> to vector<16x1xf32>
    %cst_28 = arith.constant 0.000000e+00 : f32
    %73 = vector.broadcast %cst_28 : f32 to vector<16x1xf32>
    %74 = arith.cmpf ogt, %72, %73 : vector<16x1xf32>
    %75 = tpu.reciprocal %72 {approx = true} : vector<16x1xf32> -> vector<16x1xf32>
    %cst_29 = arith.constant 0.000000e+00 : f32
    %76 = vector.broadcast %cst_29 : f32 to vector<16x1xf32>
    %77 = arith.select %74, %75, %76 : vector<16x1xi1>, vector<16x1xf32>
    %78 = vector.broadcast %77 : vector<16x1xf32> to vector<16x16xf32>
    %79 = arith.mulf %70, %78 : vector<16x16xf32>
    %80 = vector.extract_strided_slice %8 {offsets = [0, 8], sizes = [16, 4], strides = [1, 1]} : vector<16x32xf32> to vector<16x4xf32>
    %cst_30 = arith.constant dense<0.000000e+00> : vector<16x4xf32>
    %81 = tpu.matmul %79, %80, %cst_30 {dimension_numbers = #tpu.dot_dimension_numbers<[1], [0], [0], [1], [0, 0, 1, 1], [], []>} : vector<16x16xf32>, vector<16x4xf32>, vector<16x4xf32> -> vector<16x4xf32>
    %82 = vector.extract_strided_slice %6 {offsets = [0, 12], sizes = [16, 4], strides = [1, 1]} : vector<16x32xf32> to vector<16x4xf32>
    %83 = vector.extract_strided_slice %7 {offsets = [0, 12], sizes = [16, 4], strides = [1, 1]} : vector<16x32xf32> to vector<16x4xf32>
    %cst_31 = arith.constant dense<0.000000e+00> : vector<16x16xf32>
    %84 = tpu.matmul %82, %83, %cst_31 {dimension_numbers = #tpu.dot_dimension_numbers<[1], [1], [0], [0], [0, 0, 1, 0], [], []>} : vector<16x4xf32>, vector<16x4xf32>, vector<16x16xf32> -> vector<16x16xf32>
    %85 = arith.addf %84, %9 : vector<16x16xf32>
    %cst_32 = arith.constant dense<0xFF800000> : vector<16xf32>
    %86 = vector.multi_reduction <maximumf>, %85, %cst_32 [1] : vector<16x16xf32> to vector<16xf32>
    %87 = vector.shape_cast %86 : vector<16xf32> to vector<16x1xf32>
    %cst_33 = arith.constant 0xFF800000 : f32
    %88 = vector.broadcast %cst_33 : f32 to vector<16x1xf32>
    %89 = arith.cmpf ogt, %87, %88 : vector<16x1xf32>
    %cst_34 = arith.constant 0.000000e+00 : f32
    %90 = vector.broadcast %cst_34 : f32 to vector<16x1xf32>
    %91 = arith.select %89, %87, %90 : vector<16x1xi1>, vector<16x1xf32>
    %92 = vector.broadcast %91 : vector<16x1xf32> to vector<16x16xf32>
    %93 = arith.subf %85, %92 : vector<16x16xf32>
    %94 = math.exp %93 : vector<16x16xf32>
    %cst_35 = arith.constant dense<0.000000e+00> : vector<16xf32>
    %95 = vector.multi_reduction <add>, %94, %cst_35 [1] : vector<16x16xf32> to vector<16xf32>
    %96 = vector.shape_cast %95 : vector<16xf32> to vector<16x1xf32>
    %cst_36 = arith.constant 0.000000e+00 : f32
    %97 = vector.broadcast %cst_36 : f32 to vector<16x1xf32>
    %98 = arith.cmpf ogt, %96, %97 : vector<16x1xf32>
    %99 = tpu.reciprocal %96 {approx = true} : vector<16x1xf32> -> vector<16x1xf32>
    %cst_37 = arith.constant 0.000000e+00 : f32
    %100 = vector.broadcast %cst_37 : f32 to vector<16x1xf32>
    %101 = arith.select %98, %99, %100 : vector<16x1xi1>, vector<16x1xf32>
    %102 = vector.broadcast %101 : vector<16x1xf32> to vector<16x16xf32>
    %103 = arith.mulf %94, %102 : vector<16x16xf32>
    %104 = vector.extract_strided_slice %8 {offsets = [0, 12], sizes = [16, 4], strides = [1, 1]} : vector<16x32xf32> to vector<16x4xf32>
    %cst_38 = arith.constant dense<0.000000e+00> : vector<16x4xf32>
    %105 = tpu.matmul %103, %104, %cst_38 {dimension_numbers = #tpu.dot_dimension_numbers<[1], [0], [0], [1], [0, 0, 1, 1], [], []>} : vector<16x16xf32>, vector<16x4xf32>, vector<16x4xf32> -> vector<16x4xf32>
    %106 = vector.extract_strided_slice %6 {offsets = [0, 16], sizes = [16, 4], strides = [1, 1]} : vector<16x32xf32> to vector<16x4xf32>
    %107 = vector.extract_strided_slice %7 {offsets = [0, 16], sizes = [16, 4], strides = [1, 1]} : vector<16x32xf32> to vector<16x4xf32>
    %cst_39 = arith.constant dense<0.000000e+00> : vector<16x16xf32>
    %108 = tpu.matmul %106, %107, %cst_39 {dimension_numbers = #tpu.dot_dimension_numbers<[1], [1], [0], [0], [0, 0, 1, 0], [], []>} : vector<16x4xf32>, vector<16x4xf32>, vector<16x16xf32> -> vector<16x16xf32>
    %109 = arith.addf %108, %9 : vector<16x16xf32>
    %cst_40 = arith.constant dense<0xFF800000> : vector<16xf32>
    %110 = vector.multi_reduction <maximumf>, %109, %cst_40 [1] : vector<16x16xf32> to vector<16xf32>
    %111 = vector.shape_cast %110 : vector<16xf32> to vector<16x1xf32>
    %cst_41 = arith.constant 0xFF800000 : f32
    %112 = vector.broadcast %cst_41 : f32 to vector<16x1xf32>
    %113 = arith.cmpf ogt, %111, %112 : vector<16x1xf32>
    %cst_42 = arith.constant 0.000000e+00 : f32
    %114 = vector.broadcast %cst_42 : f32 to vector<16x1xf32>
    %115 = arith.select %113, %111, %114 : vector<16x1xi1>, vector<16x1xf32>
    %116 = vector.broadcast %115 : vector<16x1xf32> to vector<16x16xf32>
    %117 = arith.subf %109, %116 : vector<16x16xf32>
    %118 = math.exp %117 : vector<16x16xf32>
    %cst_43 = arith.constant dense<0.000000e+00> : vector<16xf32>
    %119 = vector.multi_reduction <add>, %118, %cst_43 [1] : vector<16x16xf32> to vector<16xf32>
    %120 = vector.shape_cast %119 : vector<16xf32> to vector<16x1xf32>
    %cst_44 = arith.constant 0.000000e+00 : f32
    %121 = vector.broadcast %cst_44 : f32 to vector<16x1xf32>
    %122 = arith.cmpf ogt, %120, %121 : vector<16x1xf32>
    %123 = tpu.reciprocal %120 {approx = true} : vector<16x1xf32> -> vector<16x1xf32>
    %cst_45 = arith.constant 0.000000e+00 : f32
    %124 = vector.broadcast %cst_45 : f32 to vector<16x1xf32>
    %125 = arith.select %122, %123, %124 : vector<16x1xi1>, vector<16x1xf32>
    %126 = vector.broadcast %125 : vector<16x1xf32> to vector<16x16xf32>
    %127 = arith.mulf %118, %126 : vector<16x16xf32>
    %128 = vector.extract_strided_slice %8 {offsets = [0, 16], sizes = [16, 4], strides = [1, 1]} : vector<16x32xf32> to vector<16x4xf32>
    %cst_46 = arith.constant dense<0.000000e+00> : vector<16x4xf32>
    %129 = tpu.matmul %127, %128, %cst_46 {dimension_numbers = #tpu.dot_dimension_numbers<[1], [0], [0], [1], [0, 0, 1, 1], [], []>} : vector<16x16xf32>, vector<16x4xf32>, vector<16x4xf32> -> vector<16x4xf32>
    %130 = vector.extract_strided_slice %6 {offsets = [0, 20], sizes = [16, 4], strides = [1, 1]} : vector<16x32xf32> to vector<16x4xf32>
    %131 = vector.extract_strided_slice %7 {offsets = [0, 20], sizes = [16, 4], strides = [1, 1]} : vector<16x32xf32> to vector<16x4xf32>
    %cst_47 = arith.constant dense<0.000000e+00> : vector<16x16xf32>
    %132 = tpu.matmul %130, %131, %cst_47 {dimension_numbers = #tpu.dot_dimension_numbers<[1], [1], [0], [0], [0, 0, 1, 0], [], []>} : vector<16x4xf32>, vector<16x4xf32>, vector<16x16xf32> -> vector<16x16xf32>
    %133 = arith.addf %132, %9 : vector<16x16xf32>
    %cst_48 = arith.constant dense<0xFF800000> : vector<16xf32>
    %134 = vector.multi_reduction <maximumf>, %133, %cst_48 [1] : vector<16x16xf32> to vector<16xf32>
    %135 = vector.shape_cast %134 : vector<16xf32> to vector<16x1xf32>
    %cst_49 = arith.constant 0xFF800000 : f32
    %136 = vector.broadcast %cst_49 : f32 to vector<16x1xf32>
    %137 = arith.cmpf ogt, %135, %136 : vector<16x1xf32>
    %cst_50 = arith.constant 0.000000e+00 : f32
    %138 = vector.broadcast %cst_50 : f32 to vector<16x1xf32>
    %139 = arith.select %137, %135, %138 : vector<16x1xi1>, vector<16x1xf32>
    %140 = vector.broadcast %139 : vector<16x1xf32> to vector<16x16xf32>
    %141 = arith.subf %133, %140 : vector<16x16xf32>
    %142 = math.exp %141 : vector<16x16xf32>
    %cst_51 = arith.constant dense<0.000000e+00> : vector<16xf32>
    %143 = vector.multi_reduction <add>, %142, %cst_51 [1] : vector<16x16xf32> to vector<16xf32>
    %144 = vector.shape_cast %143 : vector<16xf32> to vector<16x1xf32>
    %cst_52 = arith.constant 0.000000e+00 : f32
    %145 = vector.broadcast %cst_52 : f32 to vector<16x1xf32>
    %146 = arith.cmpf ogt, %144, %145 : vector<16x1xf32>
    %147 = tpu.reciprocal %144 {approx = true} : vector<16x1xf32> -> vector<16x1xf32>
    %cst_53 = arith.constant 0.000000e+00 : f32
    %148 = vector.broadcast %cst_53 : f32 to vector<16x1xf32>
    %149 = arith.select %146, %147, %148 : vector<16x1xi1>, vector<16x1xf32>
    %150 = vector.broadcast %149 : vector<16x1xf32> to vector<16x16xf32>
    %151 = arith.mulf %142, %150 : vector<16x16xf32>
    %152 = vector.extract_strided_slice %8 {offsets = [0, 20], sizes = [16, 4], strides = [1, 1]} : vector<16x32xf32> to vector<16x4xf32>
    %cst_54 = arith.constant dense<0.000000e+00> : vector<16x4xf32>
    %153 = tpu.matmul %151, %152, %cst_54 {dimension_numbers = #tpu.dot_dimension_numbers<[1], [0], [0], [1], [0, 0, 1, 1], [], []>} : vector<16x16xf32>, vector<16x4xf32>, vector<16x4xf32> -> vector<16x4xf32>
    %154 = vector.extract_strided_slice %6 {offsets = [0, 24], sizes = [16, 4], strides = [1, 1]} : vector<16x32xf32> to vector<16x4xf32>
    %155 = vector.extract_strided_slice %7 {offsets = [0, 24], sizes = [16, 4], strides = [1, 1]} : vector<16x32xf32> to vector<16x4xf32>
    %cst_55 = arith.constant dense<0.000000e+00> : vector<16x16xf32>
    %156 = tpu.matmul %154, %155, %cst_55 {dimension_numbers = #tpu.dot_dimension_numbers<[1], [1], [0], [0], [0, 0, 1, 0], [], []>} : vector<16x4xf32>, vector<16x4xf32>, vector<16x16xf32> -> vector<16x16xf32>
    %157 = arith.addf %156, %9 : vector<16x16xf32>
    %cst_56 = arith.constant dense<0xFF800000> : vector<16xf32>
    %158 = vector.multi_reduction <maximumf>, %157, %cst_56 [1] : vector<16x16xf32> to vector<16xf32>
    %159 = vector.shape_cast %158 : vector<16xf32> to vector<16x1xf32>
    %cst_57 = arith.constant 0xFF800000 : f32
    %160 = vector.broadcast %cst_57 : f32 to vector<16x1xf32>
    %161 = arith.cmpf ogt, %159, %160 : vector<16x1xf32>
    %cst_58 = arith.constant 0.000000e+00 : f32
    %162 = vector.broadcast %cst_58 : f32 to vector<16x1xf32>
    %163 = arith.select %161, %159, %162 : vector<16x1xi1>, vector<16x1xf32>
    %164 = vector.broadcast %163 : vector<16x1xf32> to vector<16x16xf32>
    %165 = arith.subf %157, %164 : vector<16x16xf32>
    %166 = math.exp %165 : vector<16x16xf32>
    %cst_59 = arith.constant dense<0.000000e+00> : vector<16xf32>
    %167 = vector.multi_reduction <add>, %166, %cst_59 [1] : vector<16x16xf32> to vector<16xf32>
    %168 = vector.shape_cast %167 : vector<16xf32> to vector<16x1xf32>
    %cst_60 = arith.constant 0.000000e+00 : f32
    %169 = vector.broadcast %cst_60 : f32 to vector<16x1xf32>
    %170 = arith.cmpf ogt, %168, %169 : vector<16x1xf32>
    %171 = tpu.reciprocal %168 {approx = true} : vector<16x1xf32> -> vector<16x1xf32>
    %cst_61 = arith.constant 0.000000e+00 : f32
    %172 = vector.broadcast %cst_61 : f32 to vector<16x1xf32>
    %173 = arith.select %170, %171, %172 : vector<16x1xi1>, vector<16x1xf32>
    %174 = vector.broadcast %173 : vector<16x1xf32> to vector<16x16xf32>
    %175 = arith.mulf %166, %174 : vector<16x16xf32>
    %176 = vector.extract_strided_slice %8 {offsets = [0, 24], sizes = [16, 4], strides = [1, 1]} : vector<16x32xf32> to vector<16x4xf32>
    %cst_62 = arith.constant dense<0.000000e+00> : vector<16x4xf32>
    %177 = tpu.matmul %175, %176, %cst_62 {dimension_numbers = #tpu.dot_dimension_numbers<[1], [0], [0], [1], [0, 0, 1, 1], [], []>} : vector<16x16xf32>, vector<16x4xf32>, vector<16x4xf32> -> vector<16x4xf32>
    %178 = vector.extract_strided_slice %6 {offsets = [0, 28], sizes = [16, 4], strides = [1, 1]} : vector<16x32xf32> to vector<16x4xf32>
    %179 = vector.extract_strided_slice %7 {offsets = [0, 28], sizes = [16, 4], strides = [1, 1]} : vector<16x32xf32> to vector<16x4xf32>
    %cst_63 = arith.constant dense<0.000000e+00> : vector<16x16xf32>
    %180 = tpu.matmul %178, %179, %cst_63 {dimension_numbers = #tpu.dot_dimension_numbers<[1], [1], [0], [0], [0, 0, 1, 0], [], []>} : vector<16x4xf32>, vector<16x4xf32>, vector<16x16xf32> -> vector<16x16xf32>
    %181 = arith.addf %180, %9 : vector<16x16xf32>
    %cst_64 = arith.constant dense<0xFF800000> : vector<16xf32>
    %182 = vector.multi_reduction <maximumf>, %181, %cst_64 [1] : vector<16x16xf32> to vector<16xf32>
    %183 = vector.shape_cast %182 : vector<16xf32> to vector<16x1xf32>
    %cst_65 = arith.constant 0xFF800000 : f32
    %184 = vector.broadcast %cst_65 : f32 to vector<16x1xf32>
    %185 = arith.cmpf ogt, %183, %184 : vector<16x1xf32>
    %cst_66 = arith.constant 0.000000e+00 : f32
    %186 = vector.broadcast %cst_66 : f32 to vector<16x1xf32>
    %187 = arith.select %185, %183, %186 : vector<16x1xi1>, vector<16x1xf32>
    %188 = vector.broadcast %187 : vector<16x1xf32> to vector<16x16xf32>
    %189 = arith.subf %181, %188 : vector<16x16xf32>
    %190 = math.exp %189 : vector<16x16xf32>
    %cst_67 = arith.constant dense<0.000000e+00> : vector<16xf32>
    %191 = vector.multi_reduction <add>, %190, %cst_67 [1] : vector<16x16xf32> to vector<16xf32>
    %192 = vector.shape_cast %191 : vector<16xf32> to vector<16x1xf32>
    %cst_68 = arith.constant 0.000000e+00 : f32
    %193 = vector.broadcast %cst_68 : f32 to vector<16x1xf32>
    %194 = arith.cmpf ogt, %192, %193 : vector<16x1xf32>
    %195 = tpu.reciprocal %192 {approx = true} : vector<16x1xf32> -> vector<16x1xf32>
    %cst_69 = arith.constant 0.000000e+00 : f32
    %196 = vector.broadcast %cst_69 : f32 to vector<16x1xf32>
    %197 = arith.select %194, %195, %196 : vector<16x1xi1>, vector<16x1xf32>
    %198 = vector.broadcast %197 : vector<16x1xf32> to vector<16x16xf32>
    %199 = arith.mulf %190, %198 : vector<16x16xf32>
    %200 = vector.extract_strided_slice %8 {offsets = [0, 28], sizes = [16, 4], strides = [1, 1]} : vector<16x32xf32> to vector<16x4xf32>
    %cst_70 = arith.constant dense<0.000000e+00> : vector<16x4xf32>
    %201 = tpu.matmul %199, %200, %cst_70 {dimension_numbers = #tpu.dot_dimension_numbers<[1], [0], [0], [1], [0, 0, 1, 1], [], []>} : vector<16x16xf32>, vector<16x4xf32>, vector<16x4xf32> -> vector<16x4xf32>
    %202 = tpu.concatenate %33, %57, %81, %105, %129, %153, %177, %201 in 1 : vector<16x4xf32>, vector<16x4xf32>, vector<16x4xf32>, vector<16x4xf32>, vector<16x4xf32>, vector<16x4xf32>, vector<16x4xf32>, vector<16x4xf32> -> vector<16x32xf32>
    %c0_71 = arith.constant 0 : index
    %c0_72 = arith.constant 0 : index
    %203 = vector.load %arg5[%c0_71, %c0_72] : memref<32x32xf32, #tpu.memory_space<vmem>>, vector<32x32xf32>
    %cst_73 = arith.constant dense<0.000000e+00> : vector<16x32xf32>
    %204 = tpu.matmul %202, %203, %cst_73 {dimension_numbers = #tpu.dot_dimension_numbers<[1], [0], [0], [1], [0, 0, 1, 1], [], []>} : vector<16x32xf32>, vector<32x32xf32>, vector<16x32xf32> -> vector<16x32xf32>
    %c0_74 = arith.constant 0 : index
    %c0_75 = arith.constant 0 : index
    %205 = vector.load %arg6[%c0_74, %c0_75] : memref<1x32xf32, #tpu.memory_space<vmem>>, vector<1x32xf32>
    %206 = vector.broadcast %205 : vector<1x32xf32> to vector<16x32xf32>
    %207 = arith.addf %204, %206 : vector<16x32xf32>
    %cst_76 = arith.constant 5.000000e-01 : f32
    %208 = vector.broadcast %cst_76 : f32 to vector<16x32xf32>
    %209 = arith.mulf %208, %207 : vector<16x32xf32>
    %cst_77 = arith.constant 0.707106769 : f32
    %210 = vector.broadcast %cst_77 : f32 to vector<16x32xf32>
    %211 = arith.mulf %207, %210 : vector<16x32xf32>
    %212 = math.erf %211 : vector<16x32xf32>
    %cst_78 = arith.constant 1.000000e+00 : f32
    %213 = vector.broadcast %cst_78 : f32 to vector<16x32xf32>
    %214 = arith.addf %213, %212 : vector<16x32xf32>
    %215 = arith.mulf %209, %214 : vector<16x32xf32>
    %c0_79 = arith.constant 0 : index
    %c0_80 = arith.constant 0 : index
    %216 = vector.load %arg7[%c0_79, %c0_80] : memref<32x32xf32, #tpu.memory_space<vmem>>, vector<32x32xf32>
    %cst_81 = arith.constant dense<0.000000e+00> : vector<16x32xf32>
    %217 = tpu.matmul %215, %216, %cst_81 {dimension_numbers = #tpu.dot_dimension_numbers<[1], [0], [0], [1], [0, 0, 1, 1], [], []>} : vector<16x32xf32>, vector<32x32xf32>, vector<16x32xf32> -> vector<16x32xf32>
    %c0_82 = arith.constant 0 : index
    %c0_83 = arith.constant 0 : index
    %218 = vector.load %arg8[%c0_82, %c0_83] : memref<1x32xf32, #tpu.memory_space<vmem>>, vector<1x32xf32>
    %219 = vector.broadcast %218 : vector<1x32xf32> to vector<16x32xf32>
    %220 = arith.addf %217, %219 : vector<16x32xf32>
    %221 = arith.addf %202, %220 : vector<16x32xf32>
    %c0_84 = arith.constant 0 : index
    %c0_85 = arith.constant 0 : index
    %222 = vector.load %arg9[%c0_84, %c0_85] : memref<16x32xf32, #tpu.memory_space<vmem>>, vector<16x32xf32>
    tpu.vector_store %arg9[%c0_84, %c0_85], %221 {strides = array<i32>} : memref<16x32xf32, #tpu.memory_space<vmem>>, vector<16x32xf32>,
    return
  }
  func.func @transform_0(%arg0: i32) -> (i32, i32) {
    %c0_i32 = arith.constant 0 : i32
    %c0_i32_0 = arith.constant 0 : i32
    %c0_i32_1 = arith.constant 0 : i32
    return %c0_i32, %c0_i32_0 : i32, i32
  }
  func.func @transform_1(%arg0: i32) -> (i32, i32) {
    %c0_i32 = arith.constant 0 : i32
    %c0_i32_0 = arith.constant 0 : i32
    %c0_i32_1 = arith.constant 0 : i32
    return %c0_i32, %c0_i32_0 : i32, i32
  }
  func.func @transform_2(%arg0: i32) -> (i32, i32) {
    %c0_i32 = arith.constant 0 : i32
    %c0_i32_0 = arith.constant 0 : i32
    %c0_i32_1 = arith.constant 0 : i32
    return %c0_i32, %c0_i32_0 : i32, i32
  }
  func.func @transform_3(%arg0: i32) -> (i32, i32) {
    %c0_i32 = arith.constant 0 : i32
    %c0_i32_0 = arith.constant 0 : i32
    %c0_i32_1 = arith.constant 0 : i32
    return %c0_i32, %c0_i32_0 : i32, i32
  }
  func.func @transform_4(%arg0: i32) -> (i32, i32) {
    %c0_i32 = arith.constant 0 : i32
    %c0_i32_0 = arith.constant 0 : i32
    %c0_i32_1 = arith.constant 0 : i32
    return %c0_i32, %c0_i32_0 : i32, i32
  }
  func.func @transform_5(%arg0: i32) -> (i32, i32) {
    %c0_i32 = arith.constant 0 : i32
    %c0_i32_0 = arith.constant 0 : i32
    %c0_i32_1 = arith.constant 0 : i32
    return %c0_i32, %c0_i32_0 : i32, i32
  }
  func.func @transform_6(%arg0: i32) -> (i32, i32) {
    %c0_i32 = arith.constant 0 : i32
    %c0_i32_0 = arith.constant 0 : i32
    %c0_i32_1 = arith.constant 0 : i32
    return %c0_i32, %c0_i32_0 : i32, i32
  }
  func.func @transform_7(%arg0: i32) -> (i32, i32) {
    %c0_i32 = arith.constant 0 : i32
    %c0_i32_0 = arith.constant 0 : i32
    %c0_i32_1 = arith.constant 0 : i32
    return %c0_i32, %c0_i32_0 : i32, i32
  }
  func.func @transform_8(%arg0: i32) -> (i32, i32) {
    %c0_i32 = arith.constant 0 : i32
    %c0_i32_0 = arith.constant 0 : i32
    %c0_i32_1 = arith.constant 0 : i32
    return %c0_i32, %c0_i32_0 : i32, i32
  }
}

</mosaic_0001>

<bundles_post_ra>
// kernel: tpu_custom_call.1
= control target key start
LH: loop header
LB: loop body
LE: loop exit
PB: predicated region body
PF: predicated region fallthrough
CT: control target
= control target key end

     0   :  { %13 = vsyncpa [#allocation3], 0  ;;  %s3271_s0 = inlined_call_operand.hbm [shape: f32[16,32], index: 0, kind: input, shape index: {}]   ;;  %s3272_s1 = inlined_call_operand.hbm [shape: f32[32,96], index: 1, kind: input, shape index: {}]   ;;  %s3273_s2 = inlined_call_operand.vmem [shape: f32[1,96], index: 2, kind: input, shape index: {}]   ;;  %s3274_s3 = inlined_call_operand.hbm [shape: f32[16,16], index: 3, kind: input, shape index: {}]   ;;  %s3275_s4 = inlined_call_operand.hbm [shape: f32[32,32], index: 4, kind: input, shape index: {}]   ;;  %s3276_s5 = inlined_call_operand.vmem [shape: f32[1,32], index: 5, kind: input, shape index: {}]   ;;  %s3277_s6 = inlined_call_operand.hbm [shape: f32[32,32], index: 6, kind: input, shape index: {}]   ;;  %s3278_s7 = inlined_call_operand.vmem [shape: f32[1,32], index: 7, kind: input, shape index: {}]   ;;  %s3279_s8 = inlined_call_operand.hbm [shape: f32[16,32], index: 8, kind: output, shape index: {}]  }
   0x1   :  { %14 = vsyncpa [#allocation6], 0 }
   0x2   :  { %15 = vsyncpa [#allocation9], 0 }
   0x3   :  { %16 = vsyncpa [#allocation4], 0  ;;  %s2864_s27 = smov [#allocation5]   ;;  %s2865_s29 = smov [#allocation8]  }
   0x4   :  { %s34_s28 = sshll.u32 %s2864_s27, 4  ;;  %s60_s30 = sshll.u32 %s2865_s29, 4  ;;  %s35_s28 = int_to_ptr.vmem [resolvable:$true] %s34_s28  ;;  %s2946_s30 = int_to_ptr.vmem [resolvable:$true] %s60_s30 }
   0x5   :  { %s2724_s11 = scalar_lea.hbm %s3272_s1, 512 }
   0x6   :  { %p2725_p0 = scmp.ne.s32.totalorder %s3272_s1, %s2724_s11  ;;  %p2728_p1 = scmp.lt.u32.totalorder %s2724_s11, %s3272_s1 }
   0x8   :  { %p2730_p2 = pnand %p2728_p1, %p2725_p0 }
   0xa   :  { %2733 = shalt.err (!%p2730_p2)
}
   0xb   :  { %s2734_s16 = scalar_lea.vmem %s35_s28, 512  ;;  %p2739_p4 = scmp.lt.s32.totalorder %s35_s28, %s35_s28 }
   0xc   :  { %p2735_p3 = scmp.ne.s32.totalorder %s35_s28, %s2734_s16  ;;  %p2740_p5 = scmp.lt.s32.totalorder %s2734_s16, %s2734_s16 }
   0xe   :  { %p2741_p6 = por %p2740_p5, %p2739_p4 }
  0x10   :  { %p2742_p7 = pnand %p2741_p6, %p2735_p3 }
  0x12   :  { %2745 = shalt.err (!%p2742_p7)
}
  0x13   :  { %s2866_s17 = smov 128   ;;  %s2867_s18 = smov 8  }
  0x14   :  { %40 = dma.hbm_to_vmem [thread:$0]  %s3272_s1, 512, %s35_s28, [#allocation6], %s2866_s17, %s2866_s17, %s2867_s18  }
  0x15   :  { %s2746_s23 = scalar_lea.hbm %s3275_s4, 512 }
  0x16   :  { %p2747_p8 = scmp.ne.s32.totalorder %s3275_s4, %s2746_s23  ;;  %p2750_p9 = scmp.lt.u32.totalorder %s2746_s23, %s3275_s4 }
  0x18   :  { %p2752_p10 = pnand %p2750_p9, %p2747_p8 }
  0x1a   :  { %2755 = shalt.err (!%p2752_p10)
}
  0x1b   :  { %s2756_s29 = scalar_lea.vmem %s2946_s30, 512  ;;  %p2761_p12 = scmp.lt.s32.totalorder %s2946_s30, %s2946_s30 }
  0x1c   :  { %p2757_p11 = scmp.ne.s32.totalorder %s2946_s30, %s2756_s29  ;;  %p2762_p13 = scmp.lt.s32.totalorder %s2756_s29, %s2756_s29 }
  0x1e   :  { %p2763_p0 = por %p2762_p13, %p2761_p12 }
  0x20   :  { %p2764_p1 = pnand %p2763_p0, %p2757_p11 }
  0x22   :  { %2767 = shalt.err (!%p2764_p1)
}
  0x23   :  { %66 = dma.hbm_to_vmem [thread:$0]  %s3275_s4, 512, %s2946_s30, [#allocation9], %s2866_s17, %s2866_s17, %s2867_s18  }
  0x24   :  { %s2868_s9 = smov [#allocation2]   ;;  %s2869_s11 = smov [#allocation7]  }
  0x25   :  { %s22_s10 = sshll.u32 %s2868_s9, 4  ;;  %s48_s12 = sshll.u32 %s2869_s11, 4  ;;  %s23_s10 = int_to_ptr.vmem [resolvable:$true] %s22_s10  ;;  %s2983_s12 = int_to_ptr.vmem [resolvable:$true] %s48_s12 }
  0x26   :  { %s2768_s15 = scalar_lea.hbm %s3271_s0, 256 }
  0x27   :  { %p2769_p2 = scmp.ne.s32.totalorder %s3271_s0, %s2768_s15  ;;  %p2772_p3 = scmp.lt.u32.totalorder %s2768_s15, %s3271_s0 }
  0x29   :  { %p2774_p4 = pnand %p2772_p3, %p2769_p2 }
  0x2b   :  { %2777 = shalt.err (!%p2774_p4)
}
  0x2c   :  { %s2778_s4 = scalar_lea.vmem %s23_s10, 256  ;;  %p2783_p6 = scmp.lt.s32.totalorder %s23_s10, %s23_s10 }
  0x2d   :  { %p2779_p5 = scmp.ne.s32.totalorder %s23_s10, %s2778_s4  ;;  %p2784_p7 = scmp.lt.s32.totalorder %s2778_s4, %s2778_s4 }
  0x2f   :  { %p2785_p8 = por %p2784_p7, %p2783_p6 }
  0x31   :  { %p2786_p9 = pnand %p2785_p8, %p2779_p5 }
  0x33   :  { %2789 = shalt.err (!%p2786_p9)
}
  0x34   :  { %28 = dma.hbm_to_vmem [thread:$0]  %s3271_s0, 256, %s23_s10, [#allocation3], %s2866_s17, %s2866_s17, %s2867_s18  }
  0x35   :  { %s2790_s25 = scalar_lea.hbm %s3274_s3, 256 }
  0x36   :  { %p2791_p10 = scmp.ne.s32.totalorder %s3274_s3, %s2790_s25  ;;  %p2794_p11 = scmp.lt.u32.totalorder %s2790_s25, %s3274_s3 }
  0x38   :  { %p2796_p12 = pnand %p2794_p11, %p2791_p10 }
  0x3a   :  { %2799 = shalt.err (!%p2796_p12)
}
  0x3b   :  { %s2800_s28 = scalar_lea.vmem %s2983_s12, 256  ;;  %p2805_p0 = scmp.lt.s32.totalorder %s2983_s12, %s2983_s12 }
  0x3c   :  { %p2801_p13 = scmp.ne.s32.totalorder %s2983_s12, %s2800_s28  ;;  %p2806_p1 = scmp.lt.s32.totalorder %s2800_s28, %s2800_s28 }
  0x3e   :  { %p2807_p2 = por %p2806_p1, %p2805_p0 }
  0x40   :  { %p2808_p3 = pnand %p2807_p2, %p2801_p13 }
  0x42   :  { %2811 = shalt.err (!%p2808_p3)
}
  0x43   :  { %54 = dma.hbm_to_vmem [thread:$0]  %s3274_s3, 256, %s2983_s12, [#allocation6], %s2866_s17, %s2866_s17, %s2867_s18  }
  0x44   :  { %s2870_s10 = smov [#allocation10]   ;;  %s2812_s15 = scalar_lea.hbm %s3277_s6, 512 }
  0x45   :  { %s74_s11 = sshll.u32 %s2870_s10, 4  ;;  %p2813_p4 = scmp.ne.s32.totalorder %s3277_s6, %s2812_s15  ;;  %s75_s11 = int_to_ptr.vmem [resolvable:$true] %s74_s11 }
  0x46   :  { %p2816_p5 = scmp.lt.u32.totalorder %s2812_s15, %s3277_s6 }
  0x48   :  { %p2818_p6 = pnand %p2816_p5, %p2813_p4 }
  0x4a   :  { %2821 = shalt.err (!%p2818_p6)
}
  0x4b   :  { %s2822_s4 = scalar_lea.vmem %s75_s11, 512  ;;  %p2827_p8 = scmp.lt.s32.totalorder %s75_s11, %s75_s11 }
  0x4c   :  { %p2823_p7 = scmp.ne.s32.totalorder %s75_s11, %s2822_s4  ;;  %p2828_p9 = scmp.lt.s32.totalorder %s2822_s4, %s2822_s4 }
  0x4e   :  { %p2829_p10 = por %p2828_p9, %p2827_p8 }
  0x50   :  { %p2830_p11 = pnand %p2829_p10, %p2823_p7 }
  0x52   :  { %2833 = shalt.err (!%p2830_p11)
}
  0x53   :  { %80 = dma.hbm_to_vmem [thread:$0]  %s3277_s6, 512, %s75_s11, [#allocation9], %s2866_s17, %s2866_s17, %s2867_s18  }
  0x54   :  { %2856 = dma.done.wait [#allocation3], 256  }
  0x55   :  { %2857 = vsyncadd [#allocation3], 4294967040 }
  0x56   :  { %2858 = dma.done.wait [#allocation6], 768  }
  0x57   :  { %2859 = vsyncadd [#allocation6], 4294966528 }
  0x58   :  { %2860 = dma.done.wait [#allocation9], 1024  }
  0x59   :  { %2861 = vsyncadd [#allocation9], 4294966272  ;;  %vm111_vm0 = vcmask 261120   ;;  %v100_v0 = vld [vmem:[#allocation5] sm:$0xff]  ;;  %v101_v1 = vld [vmem:[#allocation5 + $0x8] sm:$0xff]  ;;  %vm201_vm1 = vcmask 31744  }
  0x5a   :  { %v102_v2 = vld [vmem:[#allocation5 + $0x10] sm:$0xff]  ;;  %v2435_v3 = vpack.c.bf16 %v101_v1, %v100_v0  ;;  %v103_v4 = vld [vmem:[#allocation5 + $0x18] sm:$0xff]  ;;  %s2871_s22 = smov 124   ;;  %s2872_s23 = smov 96   ;;  %vm3056_vm2 = vmpackc.low %vm201_vm1, %vm201_vm1  ;;  %vm285_vm3 = vcmask 130048  }
  0x5b   :  { %v98_v5 = vld [vmem:[#allocation2] sm:$0xff]  ;;  %v2439_v6 = vpack.c.bf16 %v103_v4, %v102_v2  ;;  %v99_v7 = vld [vmem:[#allocation2 + $0x8] sm:$0xff]  ;;  %v3072_v25 = vld [vmem:[#allocation7 + $0x8] sm:$0xff]  ;;  %s2874_s24 = smov 64   ;;  %s2875_s25 = smov 88  }
  0x5c   :  { %2298 = vmatprep.mubr.msk.f32.mxu0 %vm111_vm0, %v98_v5  ;;  %2436 = vmatprep.subr.bf16.mxu0 %v2435_v3  ;;  %v2151_v8 = vld [vmem:[%s3273_s2] ss:$0 sm:$0xff]  ;;  %s2873_s2 = smov 92   ;;  %v3074_v26 = vld [vmem:[#allocation7] sm:$0xff]  ;;  %s2876_s26 = smov 60  }
  0x5d   :  { %2438 = vmatpush3.bf16.msra.mxu0 %v2435_v3  ;;  %s2877_s27 = smov 120   ;;  %s2878_s29 = smov 84  }
  0x5e   :  { %2440 = vmatprep.subr.bf16.mxu0 %v2439_v6  ;;  %s2879_s1 = smov 116   ;;  %s2880_s28 = smov 56  }
  0x5f   :  { %s2881_s0 = smov 80   ;;  %s2882_s9 = smov 112  }
  0x60   :  { %s2883_s10 = smov 52   ;;  %s2884_s11 = smov 76  }
  0x61   :  { %2442 = vmatpush3.bf16.msra.mxu0 %v2439_v6  ;;  %s2885_s13 = smov 108   ;;  %s2886_s14 = smov 48  }
  0x62   :  { %s2887_s15 = smov 72   ;;  %s2888_s16 = smov 104  }
  0x63   :  { %s2889_s19 = smov 44   ;;  %s2890_s20 = smov 68  }
  0x64   :  { %2299 = vmatmul.mubr.msk.f32.vlgmr.msra.gmra.mrb[0].mxu0 %vm111_vm0, %v99_v7  ;;  %s2891_s21 = smov 100   ;;  %s2892_s4 = smov 40  }
  0x65   :  { %s2893_s3 = smov 4   ;;  %s2894_s12 = smov 36  }
  0x66   :  { %s2895_s6 = smov 12   ;;  %s2896_s30 = smov 16  }
 0x137   :  { %v2300_v9 = vpop.f32.mrb[0].mxu0 }
 0x138   :  { %v3040_v10 = vadd.f32 %v2300_v9, %v2151_v8  ;;  %v184_v11 = vpop.f32.mrb[1].mxu0 }
 0x139   :  { %v3042_v12 = vadd.f32 %v2151_v8, %v184_v11 }
 0x13b   :  { %403 = vrot.lane.b32.xlu1 %v3042_v12, %s2871_s22  ;;  %2305 = vmatprep.mubr.msk.f32.mxu1 %vm201_vm1, %v3042_v12  ;;  %v3049_v13 = vpack.i.bf16 %v3040_v10, %v3042_v12 }
 0x13d   :  { %2577 = vrot.lane.b32.xlu0 %v3049_v13, %s2872_s23  ;;  %s2898_s23 = smov 24  }
 0x13f   :  { %405 = vrot.lane.b32.xlu1 %v3040_v10, %s2871_s22  ;;  %s2897_s22 = smov 20  }
 0x141   :  { %2582 = vrot.lane.b32.xlu0 %v3049_v13, %s2873_s2  ;;  %s2899_s2 = smov 28  }
 0x1ad   :  { %v404_v23 = vpop.permute.xlu1 %403 }
 0x1af   :  { %v2578_v14 = vpop.permute.xlu0 %2577 }
 0x1b0   :  { %v2580_v15 = vunpack.i.h.bf16 %v2578_v14  ;;  %v2579_v16 = vunpack.i.l.bf16 %v2578_v14 }
 0x1b1   :  { %v406_v24 = vpop.permute.xlu1 %405 }
 0x1b2   :  { %v2443_v18 = vpack.c.bf16 %v2580_v15, %v2579_v16 }
 0x1b3   :  { %v2583_v19 = vpop.permute.xlu0 %2582 }
 0x1b4   :  { %v2585_v20 = vunpack.i.h.bf16 %v2583_v19  ;;  %v2584_v21 = vunpack.i.l.bf16 %v2583_v19  ;;  %2445 = vmatprep.subr.msk.bf16.mxu1 %vm3056_vm2, %v2443_v18 }
 0x1b5   :  { %2448 = vmatpush3.bf16.xpose.msk.msra.mxu1 %vm3056_vm2, %v2443_v18 }
 0x1b6   :  { %v2453_v22 = vpack.c.bf16 %v2585_v20, %v2584_v21 }
 0x1b8   :  { %2455 = vmatprep.subr.msk.bf16.mxu1 %vm3056_vm2, %v2453_v22 }
 0x1bc   :  { %2306 = vmatmul.mubr.msk.f32.vlgmr.msra.gmra.mrb[0].mxu1 %vm201_vm1, %v3040_v10 }
 0x1bd   :  { %2458 = vmatpush3.bf16.xpose.msk.msra.mxu1 %vm3056_vm2, %v2453_v22  ;;  %2319 = vmatprep.mubr.msk.f32.mxu1 %vm201_vm1, %v404_v23 }
 0x1c4   :  { %2320 = vmatmul.mubr.msk.f32.vlgmr.msra.gmra.mrb[2].mxu1 %vm201_vm1, %v406_v24 }
 0x28f   :  { %v2307_v27 = vpop.f32.mrb[0].mxu1 }
 0x290   :  { %v282_v28 = vadd.f32 %v2307_v27, %v3072_v25  ;;  %v276_v29 = vpop.f32.mrb[1].mxu1 }
 0x291   :  { %v277_v30 = vadd.f32 %v276_v29, %v3074_v26 }
 0x292   :  { %v289_v31 = vsel %vm285_vm3, %v282_v28, -inf }
 0x293   :  { %290 = vmax.xlane.f32.xlu1 %v289_v31  ;;  %v286_v32 = vsel %vm285_vm3, %v277_v30, -inf }
 0x294   :  { %287 = vmax.xlane.f32.xlu0 %v286_v32 }
 0x297   :  { %v2321_v33 = vpop.f32.mrb[2].mxu1 }
 0x298   :  { %v485_v34 = vpop.f32.mrb[3].mxu1  ;;  %v491_v36 = vadd.f32 %v2321_v33, %v3072_v25 }
 0x299   :  { %v486_v35 = vadd.f32 %v485_v34, %v3074_v26 }
 0x29a   :  { %v497_v38 = vsel %vm285_vm3, %v491_v36, -inf }
 0x29b   :  { %v494_v37 = vsel %vm285_vm3, %v486_v35, -inf }
 0x29c   :  { %495 = vmax.xlane.f32.xlu0 %v494_v37 }
 0x2a0   :  { %498 = vmax.xlane.f32.xlu0 %v497_v38 }
 0x2a4   :  { %2587 = vrot.lane.b32.xlu1 %v3049_v13, %s2874_s24 }
 0x320   :  { %v291_v39 = vpop.xlane.xlu1 %290 }
 0x321   :  { %vm293_vm4 = vcmp.gt.f32.partialorder %v291_v39, -inf  ;;  %v288_v40 = vpop.xlane.xlu0 %287 }
 0x322   :  { %v295_v41 = vsel %vm293_vm4, %v291_v39, 0.0  ;;  %vm292_vm5 = vcmp.gt.f32.partialorder %v288_v40, -inf }
 0x323   :  { %v297_v42 = vsub.f32 %v282_v28, %v295_v41  ;;  %v294_v43 = vsel %vm292_vm5, %v288_v40, 0.0 }
 0x324   :  { %v296_v44 = vsub.f32 %v277_v30, %v294_v43  ;;  %v2588_v45 = vpop.permute.xlu1 %2587 }
 0x325   :  { %v300_v46 = vmul.f32 1.442695, %v297_v42  ;;  %v2590_v47 = vunpack.i.h.bf16 %v2588_v45  ;;  %v2589_v48 = vunpack.i.l.bf16 %v2588_v45 }
 0x326   :  { %v298_v49 = vmul.f32 1.442695, %v296_v44 }
 0x327   :  { %2656 = vpow2.f32 %v300_v46  ;;  %v2449_v50 = vpack.c.bf16 %v2590_v47, %v2589_v48 }
 0x328   :  { %2658 = vpow2.f32 %v298_v49 }
 0x329   :  { %2450 = vmatprep.subr.bf16.mxu0 %v2449_v50  ;;  %v496_v51 = vpop.xlane.xlu0 %495 }
 0x32a   :  { %2452 = vmatpush3.bf16.msra.mxu0 %v2449_v50  ;;  %vm500_vm7 = vcmp.gt.f32.partialorder %v496_v51, -inf }
 0x32b   :  { %v502_v62 = vsel %vm500_vm7, %v496_v51, 0.0 }
 0x32c   :  { %v504_v63 = vsub.f32 %v486_v35, %v502_v62 }
 0x32d   :  { %v499_v52 = vpop.xlane.xlu0 %498 }
 0x32e   :  { %vm501_vm6 = vcmp.gt.f32.partialorder %v499_v52, -inf  ;;  %v506_v0 = vmul.f32 1.442695, %v504_v63 }
 0x32f   :  { %v503_v53 = vsel %vm501_vm6, %v499_v52, 0.0 }
 0x330   :  { %v505_v54 = vsub.f32 %v491_v36, %v503_v53 }
 0x331   :  { %v2657_v55 = vpop.eup %2656 }
 0x332   :  { %v2659_v56 = vpop.eup %2658  ;;  %v508_v57 = vmul.f32 1.442695, %v505_v54  ;;  %v305_v58 = vsel %vm285_vm3, %v2657_v55, 0.0 }
 0x333   :  { %306 = vadd.xlane.f32.xlu0 %v305_v58  ;;  %v302_v59 = vsel %vm285_vm3, %v2659_v56, 0.0 }
 0x334   :  { %2660 = vpow2.f32 %v508_v57  ;;  %303 = vadd.xlane.f32.xlu1 %v302_v59 }
 0x335   :  { %2662 = vpow2.f32 %v506_v0 }
 0x33e   :  { %v2661_v60 = vpop.eup %2660 }
 0x33f   :  { %v513_v61 = vsel %vm285_vm3, %v2661_v60, 0.0  ;;  %v2663_v1 = vpop.eup %2662 }
 0x340   :  { %514 = vadd.xlane.f32.xlu0 %v513_v61  ;;  %v510_v2 = vsel %vm285_vm3, %v2663_v1, 0.0 }
 0x345   :  { %2597 = vrot.lane.b32.xlu1 %v3049_v13, %s2875_s25 }
 0x356   :  { %2592 = vrot.lane.b32.xlu0 %v3049_v13, %s2876_s26 }
 0x35a   :  { %613 = vrot.lane.b32.xlu0 %v3040_v10, %s2877_s27 }
 0x369   :  { %511 = vadd.xlane.f32.xlu1 %v510_v2 }
 0x37a   :  { %611 = vrot.lane.b32.xlu1 %v3042_v12, %s2877_s27  ;;  %s2900_s27 = smov [#allocation11]  }
 0x3c0   :  { %v307_v3 = vpop.xlane.xlu0 %306 }
 0x3c1   :  { %2664 = vrcp.f32 %v307_v3  ;;  %v304_v4 = vpop.xlane.xlu1 %303  ;;  %vm309_vm8 = vcmp.gt.f32.partialorder %v307_v3, 0.0 }
 0x3c2   :  { %2666 = vrcp.f32 %v304_v4  ;;  %vm308_vm9 = vcmp.gt.f32.partialorder %v304_v4, 0.0 }
 0x3c5   :  { %v2598_v15 = vpop.permute.xlu1 %2597 }
 0x3c6   :  { %v2600_v18 = vunpack.i.h.bf16 %v2598_v15  ;;  %v2599_v19 = vunpack.i.l.bf16 %v2598_v15 }
 0x3c8   :  { %v2463_v23 = vpack.c.bf16 %v2600_v18, %v2599_v19 }
 0x3cb   :  { %v2665_v5 = vpop.eup %2664 }
 0x3cc   :  { %v2667_v6 = vpop.eup %2666  ;;  %v313_v7 = vsel %vm309_vm8, %v2665_v5, 0.0 }
 0x3cd   :  { %v312_v8 = vsel %vm308_vm9, %v2667_v6, 0.0  ;;  %v515_v9 = vpop.xlane.xlu0 %514  ;;  %v315_v14 = vmul.f32 %v2657_v55, %v313_v7 }
 0x3ce   :  { %v314_v11 = vmul.f32 %v2659_v56, %v312_v8  ;;  %2668 = vrcp.f32 %v515_v9  ;;  %vm517_vm10 = vcmp.gt.f32.partialorder %v515_v9, 0.0 }
 0x3d0   :  { %2312 = vmatprep.mubr.msk.f32.mxu0 %vm285_vm3, %v314_v11 }
 0x3d1   :  { %2313 = vmatmul.mubr.msk.f32.vlgmr.msra.gmra.mrb[2].mxu0 %vm285_vm3, %v315_v14  ;;  %v2593_v16 = vpop.permute.xlu0 %2592 }
 0x3d2   :  { %v2595_v20 = vunpack.i.h.bf16 %v2593_v16  ;;  %v2594_v21 = vunpack.i.l.bf16 %v2593_v16 }
 0x3d4   :  { %v2459_v22 = vpack.c.bf16 %v2595_v20, %v2594_v21 }
 0x3d5   :  { %v614_v34 = vpop.permute.xlu0 %613 }
 0x3d6   :  { %2460 = vmatprep.subr.bf16.mxu0 %v2459_v22 }
 0x3d7   :  { %2462 = vmatpush3.bf16.msra.mxu0 %v2459_v22 }
 0x3d8   :  { %2465 = vmatprep.subr.msk.bf16.mxu0 %vm3056_vm2, %v2463_v23  ;;  %v2669_v27 = vpop.eup %2668 }
 0x3d9   :  { %v521_v29 = vsel %vm517_vm10, %v2669_v27, 0.0 }
 0x3da   :  { %v523_v32 = vmul.f32 %v2661_v60, %v521_v29 }
 0x3f6   :  { %v512_v24 = vpop.xlane.xlu1 %511 }
 0x3f7   :  { %2670 = vrcp.f32 %v512_v24  ;;  %vm516_vm11 = vcmp.gt.f32.partialorder %v512_v24, 0.0 }
 0x3fa   :  { %v612_v33 = vpop.permute.xlu1 %611 }
 0x401   :  { %v2671_v28 = vpop.eup %2670 }
 0x402   :  { %v520_v30 = vsel %vm516_vm11, %v2671_v28, 0.0 }
 0x403   :  { %v522_v31 = vmul.f32 %v2663_v1, %v520_v30 }
 0x405   :  { %2326 = vmatprep.mubr.msk.f32.mxu0 %vm285_vm3, %v522_v31 }
 0x406   :  { %2327 = vmatmul.mubr.msk.f32.vlgmr.msra.gmra.mrb[4].mxu0 %vm285_vm3, %v523_v32 }
 0x407   :  { %2468 = vmatpush3.bf16.xpose.msk.msra.mxu0 %vm3056_vm2, %v2463_v23  ;;  %2333 = vmatprep.mubr.msk.f32.mxu0 %vm201_vm1, %v612_v33 }
 0x40e   :  { %2334 = vmatmul.mubr.msk.f32.vlgmr.msra.gmra.mrb[6].mxu0 %vm201_vm1, %v614_v34 }
 0x4a4   :  { %v3103_v35 = vpop.f32.mrb[2].mxu0 }
 0x4a5   :  { %v3105_v36 = vpop.f32.mrb[3].mxu0 }
 0x4d9   :  { %v3107_v37 = vpop.f32.mrb[4].mxu0 }
 0x4da   :  { %v3109_v38 = vpop.f32.mrb[5].mxu0 }
 0x4e1   :  { %v2335_v39 = vpop.f32.mrb[6].mxu0 }
 0x4e2   :  { %v699_v40 = vadd.f32 %v2335_v39, %v3072_v25  ;;  %v693_v41 = vpop.f32.mrb[7].mxu0 }
 0x4e3   :  { %v694_v42 = vadd.f32 %v693_v41, %v3074_v26 }
 0x4e4   :  { %v705_v43 = vsel %vm285_vm3, %v699_v40, -inf }
 0x4e5   :  { %706 = vmax.xlane.f32.xlu0 %v705_v43  ;;  %v702_v44 = vsel %vm285_vm3, %v694_v42, -inf }
 0x4e6   :  { %703 = vmax.xlane.f32.xlu1 %v702_v44 }
 0x572   :  { %v707_v45 = vpop.xlane.xlu0 %706 }
 0x573   :  { %vm709_vm12 = vcmp.gt.f32.partialorder %v707_v45, -inf  ;;  %v704_v46 = vpop.xlane.xlu1 %703 }
 0x574   :  { %v711_v47 = vsel %vm709_vm12, %v707_v45, 0.0  ;;  %vm708_vm13 = vcmp.gt.f32.partialorder %v704_v46, -inf }
 0x575   :  { %v713_v48 = vsub.f32 %v699_v40, %v711_v47  ;;  %v710_v49 = vsel %vm708_vm13, %v704_v46, 0.0 }
 0x576   :  { %v712_v50 = vsub.f32 %v694_v42, %v710_v49 }
 0x577   :  { %v716_v51 = vmul.f32 1.442695, %v713_v48 }
 0x578   :  { %v714_v52 = vmul.f32 1.442695, %v712_v50 }
 0x579   :  { %2672 = vpow2.f32 %v716_v51 }
 0x57a   :  { %2674 = vpow2.f32 %v714_v52 }
 0x583   :  { %v2673_v53 = vpop.eup %2672 }
 0x584   :  { %v2675_v54 = vpop.eup %2674  ;;  %v721_v55 = vsel %vm285_vm3, %v2673_v53, 0.0 }
 0x585   :  { %722 = vadd.xlane.f32.xlu1 %v721_v55  ;;  %v718_v56 = vsel %vm285_vm3, %v2675_v54, 0.0 }
 0x586   :  { %719 = vadd.xlane.f32.xlu0 %v718_v56 }
 0x596   :  { %2607 = vrot.lane.b32.xlu1 %v3049_v13, %s2878_s29  ;;  %s2137_s29 = sshll.u32 %s2900_s27, 4  ;;  %s2138_s29 = int_to_ptr.vmem [resolvable:$true] %s2137_s29 }
 0x597   :  { %p2839_p13 = scmp.lt.s32.totalorder %s2138_s29, %s2138_s29 }
 0x59a   :  { %819 = vrot.lane.b32.xlu1 %v3042_v12, %s2879_s1 }
 0x59c   :  { %2602 = vrot.lane.b32.xlu0 %v3049_v13, %s2880_s28 }
 0x5a0   :  { %821 = vrot.lane.b32.xlu0 %v3040_v10, %s2879_s1  ;;  %s2834_s1 = scalar_lea.vmem %s2138_s29, 256 }
 0x5a1   :  { %p2835_p12 = scmp.ne.s32.totalorder %s2138_s29, %s2834_s1  ;;  %p2840_p0 = scmp.lt.s32.totalorder %s2834_s1, %s2834_s1 }
 0x5a3   :  { %p2841_p1 = por %p2840_p0, %p2839_p13 }
 0x5a5   :  { %p2842_p2 = pnand %p2841_p1, %p2835_p12 }
 0x612   :  { %v723_v57 = vpop.xlane.xlu1 %722 }
 0x613   :  { %2676 = vrcp.f32 %v723_v57  ;;  %v720_v58 = vpop.xlane.xlu0 %719  ;;  %vm725_vm14 = vcmp.gt.f32.partialorder %v723_v57, 0.0 }
 0x614   :  { %2678 = vrcp.f32 %v720_v58  ;;  %vm724_vm15 = vcmp.gt.f32.partialorder %v720_v58, 0.0 }
 0x616   :  { %v2608_v59 = vpop.permute.xlu1 %2607 }
 0x617   :  { %v2603_v60 = vpop.permute.xlu0 %2602  ;;  %v2610_v61 = vunpack.i.h.bf16 %v2608_v59  ;;  %v2609_v62 = vunpack.i.l.bf16 %v2608_v59 }
 0x618   :  { %v2605_v63 = vunpack.i.h.bf16 %v2603_v60  ;;  %v2604_v0 = vunpack.i.l.bf16 %v2603_v60 }
 0x619   :  { %v2473_v2 = vpack.c.bf16 %v2610_v61, %v2609_v62 }
 0x61a   :  { %v2469_v1 = vpack.c.bf16 %v2605_v63, %v2604_v0  ;;  %v820_v9 = vpop.permute.xlu1 %819 }
 0x61b   :  { %v822_v11 = vpop.permute.xlu0 %821 }
 0x61c   :  { %2470 = vmatprep.subr.bf16.mxu1 %v2469_v1 }
 0x61d   :  { %v2677_v3 = vpop.eup %2676  ;;  %2472 = vmatpush3.bf16.msra.mxu1 %v2469_v1 }
 0x61e   :  { %v2679_v4 = vpop.eup %2678  ;;  %v729_v5 = vsel %vm725_vm14, %v2677_v3, 0.0  ;;  %2475 = vmatprep.subr.msk.bf16.mxu1 %vm3056_vm2, %v2473_v2 }
 0x61f   :  { %v728_v6 = vsel %vm724_vm15, %v2679_v4, 0.0  ;;  %v731_v8 = vmul.f32 %v2673_v53, %v729_v5 }
 0x620   :  { %v730_v7 = vmul.f32 %v2675_v54, %v728_v6 }
 0x622   :  { %2340 = vmatprep.mubr.msk.f32.mxu1 %vm285_vm3, %v730_v7 }
 0x623   :  { %2341 = vmatmul.mubr.msk.f32.vlgmr.msra.gmra.mrb[4].mxu1 %vm285_vm3, %v731_v8 }
 0x624   :  { %2347 = vmatprep.mubr.msk.f32.mxu1 %vm201_vm1, %v820_v9 }
 0x626   :  { %2478 = vmatpush3.bf16.xpose.msk.msra.mxu1 %vm3056_vm2, %v2473_v2 }
 0x62d   :  { %2348 = vmatmul.mubr.msk.f32.vlgmr.msra.gmra.mrb[6].mxu1 %vm201_vm1, %v822_v11 }
 0x6f6   :  { %v3129_v14 = vpop.f32.mrb[4].mxu1 }
 0x6f7   :  { %v3131_v15 = vpop.f32.mrb[5].mxu1 }
 0x700   :  { %v2349_v16 = vpop.f32.mrb[6].mxu1 }
 0x701   :  { %v907_v18 = vadd.f32 %v2349_v16, %v3072_v25  ;;  %v901_v19 = vpop.f32.mrb[7].mxu1 }
 0x702   :  { %v902_v20 = vadd.f32 %v901_v19, %v3074_v26 }
 0x703   :  { %v913_v21 = vsel %vm285_vm3, %v907_v18, -inf }
 0x704   :  { %914 = vmax.xlane.f32.xlu0 %v913_v21  ;;  %v910_v22 = vsel %vm285_vm3, %v902_v20, -inf }
 0x705   :  { %911 = vmax.xlane.f32.xlu1 %v910_v22 }
 0x791   :  { %v915_v23 = vpop.xlane.xlu0 %914 }
 0x792   :  { %vm917_vm4 = vcmp.gt.f32.partialorder %v915_v23, -inf  ;;  %v912_v24 = vpop.xlane.xlu1 %911 }
 0x793   :  { %v919_v27 = vsel %vm917_vm4, %v915_v23, 0.0  ;;  %vm916_vm5 = vcmp.gt.f32.partialorder %v912_v24, -inf }
 0x794   :  { %v921_v28 = vsub.f32 %v907_v18, %v919_v27  ;;  %v918_v29 = vsel %vm916_vm5, %v912_v24, 0.0 }
 0x795   :  { %v920_v30 = vsub.f32 %v902_v20, %v918_v29 }
 0x796   :  { %v924_v31 = vmul.f32 1.442695, %v921_v28 }
 0x797   :  { %v922_v32 = vmul.f32 1.442695, %v920_v30 }
 0x798   :  { %2680 = vpow2.f32 %v924_v31 }
 0x799   :  { %2682 = vpow2.f32 %v922_v32 }
 0x7a2   :  { %v2681_v33 = vpop.eup %2680 }
 0x7a3   :  { %v2683_v34 = vpop.eup %2682  ;;  %v929_v39 = vsel %vm285_vm3, %v2681_v33, 0.0 }
 0x7a4   :  { %930 = vadd.xlane.f32.xlu1 %v929_v39  ;;  %v926_v40 = vsel %vm285_vm3, %v2683_v34, 0.0 }
 0x7a5   :  { %927 = vadd.xlane.f32.xlu0 %v926_v40 }
 0x7b5   :  { %2617 = vrot.lane.b32.xlu1 %v3049_v13, %s2881_s0 }
 0x7b9   :  { %1027 = vrot.lane.b32.xlu1 %v3042_v12, %s2882_s9 }
 0x7bb   :  { %2612 = vrot.lane.b32.xlu0 %v3049_v13, %s2883_s10 }
 0x7bf   :  { %1029 = vrot.lane.b32.xlu0 %v3040_v10, %s2882_s9 }
 0x831   :  { %v931_v41 = vpop.xlane.xlu1 %930 }
 0x832   :  { %2684 = vrcp.f32 %v931_v41  ;;  %v928_v42 = vpop.xlane.xlu0 %927  ;;  %vm933_vm6 = vcmp.gt.f32.partialorder %v931_v41, 0.0 }
 0x833   :  { %2686 = vrcp.f32 %v928_v42  ;;  %vm932_vm7 = vcmp.gt.f32.partialorder %v928_v42, 0.0 }
 0x835   :  { %v2618_v43 = vpop.permute.xlu1 %2617 }
 0x836   :  { %v2613_v44 = vpop.permute.xlu0 %2612  ;;  %v2620_v45 = vunpack.i.h.bf16 %v2618_v43  ;;  %v2619_v46 = vunpack.i.l.bf16 %v2618_v43 }
 0x837   :  { %v2615_v47 = vunpack.i.h.bf16 %v2613_v44  ;;  %v2614_v48 = vunpack.i.l.bf16 %v2613_v44 }
 0x838   :  { %v2483_v50 = vpack.c.bf16 %v2620_v45, %v2619_v46 }
 0x839   :  { %v2479_v49 = vpack.c.bf16 %v2615_v47, %v2614_v48  ;;  %v1028_v57 = vpop.permute.xlu1 %1027 }
 0x83a   :  { %v1030_v58 = vpop.permute.xlu0 %1029 }
 0x83b   :  { %2480 = vmatprep.subr.bf16.mxu0 %v2479_v49 }
 0x83c   :  { %v2685_v51 = vpop.eup %2684  ;;  %2482 = vmatpush3.bf16.msra.mxu0 %v2479_v49 }
 0x83d   :  { %v2687_v52 = vpop.eup %2686  ;;  %v937_v53 = vsel %vm933_vm6, %v2685_v51, 0.0  ;;  %2485 = vmatprep.subr.msk.bf16.mxu0 %vm3056_vm2, %v2483_v50 }
 0x83e   :  { %v936_v54 = vsel %vm932_vm7, %v2687_v52, 0.0  ;;  %v939_v56 = vmul.f32 %v2681_v33, %v937_v53 }
 0x83f   :  { %v938_v55 = vmul.f32 %v2683_v34, %v936_v54 }
 0x841   :  { %2354 = vmatprep.mubr.msk.f32.mxu0 %vm285_vm3, %v938_v55 }
 0x842   :  { %2355 = vmatmul.mubr.msk.f32.vlgmr.msra.gmra.mrb[8].mxu0 %vm285_vm3, %v939_v56 }
 0x843   :  { %2361 = vmatprep.mubr.msk.f32.mxu0 %vm201_vm1, %v1028_v57 }
 0x845   :  { %2488 = vmatpush3.bf16.xpose.msk.msra.mxu0 %vm3056_vm2, %v2483_v50 }
 0x84c   :  { %2362 = vmatmul.mubr.msk.f32.vlgmr.msra.gmra.mrb[10].mxu0 %vm201_vm1, %v1030_v58 }
 0x915   :  { %v3151_v59 = vpop.f32.mrb[8].mxu0 }
 0x916   :  { %v3153_v60 = vpop.f32.mrb[9].mxu0 }
 0x91f   :  { %v2363_v61 = vpop.f32.mrb[10].mxu0 }
 0x920   :  { %v1115_v62 = vadd.f32 %v2363_v61, %v3072_v25  ;;  %v1109_v63 = vpop.f32.mrb[11].mxu0 }
 0x921   :  { %v1110_v0 = vadd.f32 %v1109_v63, %v3074_v26 }
 0x922   :  { %v1121_v1 = vsel %vm285_vm3, %v1115_v62, -inf }
 0x923   :  { %1122 = vmax.xlane.f32.xlu0 %v1121_v1  ;;  %v1118_v2 = vsel %vm285_vm3, %v1110_v0, -inf }
 0x924   :  { %1119 = vmax.xlane.f32.xlu1 %v1118_v2 }
 0x9b0   :  { %v1123_v3 = vpop.xlane.xlu0 %1122 }
 0x9b1   :  { %vm1125_vm8 = vcmp.gt.f32.partialorder %v1123_v3, -inf  ;;  %v1120_v4 = vpop.xlane.xlu1 %1119 }
 0x9b2   :  { %v1127_v5 = vsel %vm1125_vm8, %v1123_v3, 0.0  ;;  %vm1124_vm9 = vcmp.gt.f32.partialorder %v1120_v4, -inf }
 0x9b3   :  { %v1129_v6 = vsub.f32 %v1115_v62, %v1127_v5  ;;  %v1126_v7 = vsel %vm1124_vm9, %v1120_v4, 0.0 }
 0x9b4   :  { %v1128_v8 = vsub.f32 %v1110_v0, %v1126_v7 }
 0x9b5   :  { %v1132_v9 = vmul.f32 1.442695, %v1129_v6 }
 0x9b6   :  { %v1130_v11 = vmul.f32 1.442695, %v1128_v8 }
 0x9b7   :  { %2688 = vpow2.f32 %v1132_v9 }
 0x9b8   :  { %2690 = vpow2.f32 %v1130_v11 }
 0x9c1   :  { %v2689_v16 = vpop.eup %2688 }
 0x9c2   :  { %v2691_v18 = vpop.eup %2690  ;;  %v1137_v19 = vsel %vm285_vm3, %v2689_v16, 0.0 }
 0x9c3   :  { %1138 = vadd.xlane.f32.xlu1 %v1137_v19  ;;  %v1134_v20 = vsel %vm285_vm3, %v2691_v18, 0.0 }
 0x9c4   :  { %1135 = vadd.xlane.f32.xlu0 %v1134_v20 }
 0x9d4   :  { %2627 = vrot.lane.b32.xlu1 %v3049_v13, %s2884_s11 }
 0x9d8   :  { %1235 = vrot.lane.b32.xlu1 %v3042_v12, %s2885_s13 }
 0x9da   :  { %2622 = vrot.lane.b32.xlu0 %v3049_v13, %s2886_s14 }
 0x9de   :  { %1237 = vrot.lane.b32.xlu0 %v3040_v10, %s2885_s13 }
 0xa50   :  { %v1139_v21 = vpop.xlane.xlu1 %1138 }
 0xa51   :  { %2692 = vrcp.f32 %v1139_v21  ;;  %v1136_v22 = vpop.xlane.xlu0 %1135  ;;  %vm1141_vm10 = vcmp.gt.f32.partialorder %v1139_v21, 0.0 }
 0xa52   :  { %2694 = vrcp.f32 %v1136_v22  ;;  %vm1140_vm11 = vcmp.gt.f32.partialorder %v1136_v22, 0.0 }
 0xa54   :  { %v2628_v23 = vpop.permute.xlu1 %2627 }
 0xa55   :  { %v2623_v24 = vpop.permute.xlu0 %2622  ;;  %v2630_v27 = vunpack.i.h.bf16 %v2628_v23  ;;  %v2629_v28 = vunpack.i.l.bf16 %v2628_v23 }
 0xa56   :  { %v2625_v29 = vunpack.i.h.bf16 %v2623_v24  ;;  %v2624_v30 = vunpack.i.l.bf16 %v2623_v24 }
 0xa57   :  { %v2493_v32 = vpack.c.bf16 %v2630_v27, %v2629_v28 }
 0xa58   :  { %v2489_v31 = vpack.c.bf16 %v2625_v29, %v2624_v30  ;;  %v1236_v43 = vpop.permute.xlu1 %1235 }
 0xa59   :  { %v1238_v44 = vpop.permute.xlu0 %1237 }
 0xa5a   :  { %2490 = vmatprep.subr.bf16.mxu1 %v2489_v31 }
 0xa5b   :  { %v2693_v33 = vpop.eup %2692  ;;  %2492 = vmatpush3.bf16.msra.mxu1 %v2489_v31 }
 0xa5c   :  { %v2695_v34 = vpop.eup %2694  ;;  %v1145_v39 = vsel %vm1141_vm10, %v2693_v33, 0.0  ;;  %2495 = vmatprep.subr.msk.bf16.mxu1 %vm3056_vm2, %v2493_v32 }
 0xa5d   :  { %v1144_v40 = vsel %vm1140_vm11, %v2695_v34, 0.0  ;;  %v1147_v42 = vmul.f32 %v2689_v16, %v1145_v39  ;;  %vm1917_vm11 = vcmask 64512  }
 0xa5e   :  { %v1146_v41 = vmul.f32 %v2691_v18, %v1144_v40 }
 0xa60   :  { %2368 = vmatprep.mubr.msk.f32.mxu1 %vm285_vm3, %v1146_v41 }
 0xa61   :  { %2369 = vmatmul.mubr.msk.f32.vlgmr.msra.gmra.mrb[8].mxu1 %vm285_vm3, %v1147_v42 }
 0xa62   :  { %2375 = vmatprep.mubr.msk.f32.mxu1 %vm201_vm1, %v1236_v43 }
 0xa64   :  { %2498 = vmatpush3.bf16.xpose.msk.msra.mxu1 %vm3056_vm2, %v2493_v32 }
 0xa6b   :  { %2376 = vmatmul.mubr.msk.f32.vlgmr.msra.gmra.mrb[10].mxu1 %vm201_vm1, %v1238_v44 }
 0xb34   :  { %v3173_v45 = vpop.f32.mrb[8].mxu1 }
 0xb35   :  { %v3175_v46 = vpop.f32.mrb[9].mxu1 }
 0xb3e   :  { %v2377_v47 = vpop.f32.mrb[10].mxu1 }
 0xb3f   :  { %v1323_v48 = vadd.f32 %v2377_v47, %v3072_v25  ;;  %v1317_v49 = vpop.f32.mrb[11].mxu1 }
 0xb40   :  { %v1318_v50 = vadd.f32 %v1317_v49, %v3074_v26 }
 0xb41   :  { %v1329_v51 = vsel %vm285_vm3, %v1323_v48, -inf }
 0xb42   :  { %1330 = vmax.xlane.f32.xlu0 %v1329_v51  ;;  %v1326_v52 = vsel %vm285_vm3, %v1318_v50, -inf }
 0xb43   :  { %1327 = vmax.xlane.f32.xlu1 %v1326_v52 }
 0xbcf   :  { %v1331_v53 = vpop.xlane.xlu0 %1330 }
 0xbd0   :  { %vm1333_vm12 = vcmp.gt.f32.partialorder %v1331_v53, -inf  ;;  %v1328_v54 = vpop.xlane.xlu1 %1327 }
 0xbd1   :  { %v1335_v55 = vsel %vm1333_vm12, %v1331_v53, 0.0  ;;  %vm1332_vm13 = vcmp.gt.f32.partialorder %v1328_v54, -inf  ;;  %vm1920_vm12 = vcmask 97280  }
 0xbd2   :  { %v1337_v56 = vsub.f32 %v1323_v48, %v1335_v55  ;;  %v1334_v57 = vsel %vm1332_vm13, %v1328_v54, 0.0  ;;  %vm1925_vm13 = vcmask 162816  }
 0xbd3   :  { %v1336_v58 = vsub.f32 %v1318_v50, %v1334_v57 }
 0xbd4   :  { %v1340_v61 = vmul.f32 1.442695, %v1337_v56 }
 0xbd5   :  { %v1338_v62 = vmul.f32 1.442695, %v1336_v58 }
 0xbd6   :  { %2696 = vpow2.f32 %v1340_v61 }
 0xbd7   :  { %2698 = vpow2.f32 %v1338_v62 }
 0xbe0   :  { %v2697_v63 = vpop.eup %2696 }
 0xbe1   :  { %v2699_v0 = vpop.eup %2698  ;;  %v1345_v1 = vsel %vm285_vm3, %v2697_v63, 0.0 }
 0xbe2   :  { %1346 = vadd.xlane.f32.xlu1 %v1345_v1  ;;  %v1342_v2 = vsel %vm285_vm3, %v2699_v0, 0.0 }
 0xbe3   :  { %1343 = vadd.xlane.f32.xlu0 %v1342_v2 }
 0xbf3   :  { %2637 = vrot.lane.b32.xlu1 %v3049_v13, %s2887_s15 }
 0xbf7   :  { %1443 = vrot.lane.b32.xlu1 %v3042_v12, %s2888_s16 }
 0xbf9   :  { %2632 = vrot.lane.b32.xlu0 %v3049_v13, %s2889_s19 }
 0xbfd   :  { %1445 = vrot.lane.b32.xlu0 %v3040_v10, %s2888_s16 }
 0xc6f   :  { %v1347_v3 = vpop.xlane.xlu1 %1346 }
 0xc70   :  { %2700 = vrcp.f32 %v1347_v3  ;;  %v1344_v4 = vpop.xlane.xlu0 %1343  ;;  %vm1349_vm14 = vcmp.gt.f32.partialorder %v1347_v3, 0.0 }
 0xc71   :  { %2702 = vrcp.f32 %v1344_v4  ;;  %vm1348_vm15 = vcmp.gt.f32.partialorder %v1344_v4, 0.0 }
 0xc73   :  { %v2638_v5 = vpop.permute.xlu1 %2637 }
 0xc74   :  { %v2633_v6 = vpop.permute.xlu0 %2632  ;;  %v2640_v7 = vunpack.i.h.bf16 %v2638_v5  ;;  %v2639_v8 = vunpack.i.l.bf16 %v2638_v5 }
 0xc75   :  { %v2635_v9 = vunpack.i.h.bf16 %v2633_v6  ;;  %v2634_v11 = vunpack.i.l.bf16 %v2633_v6 }
 0xc76   :  { %v2503_v18 = vpack.c.bf16 %v2640_v7, %v2639_v8 }
 0xc77   :  { %v2499_v16 = vpack.c.bf16 %v2635_v9, %v2634_v11  ;;  %v1444_v27 = vpop.permute.xlu1 %1443 }
 0xc78   :  { %v1446_v28 = vpop.permute.xlu0 %1445 }
 0xc79   :  { %2500 = vmatprep.subr.bf16.mxu0 %v2499_v16 }
 0xc7a   :  { %v2701_v19 = vpop.eup %2700  ;;  %2502 = vmatpush3.bf16.msra.mxu0 %v2499_v16 }
 0xc7b   :  { %v2703_v20 = vpop.eup %2702  ;;  %v1353_v21 = vsel %vm1349_vm14, %v2701_v19, 0.0  ;;  %2505 = vmatprep.subr.msk.bf16.mxu0 %vm3056_vm2, %v2503_v18  ;;  %vm1928_vm14 = vcmask 195584  }
 0xc7c   :  { %v1352_v22 = vsel %vm1348_vm15, %v2703_v20, 0.0  ;;  %v1355_v24 = vmul.f32 %v2697_v63, %v1353_v21  ;;  %vm1931_vm15 = vcmask 228352  }
 0xc7d   :  { %v1354_v23 = vmul.f32 %v2699_v0, %v1352_v22 }
 0xc7f   :  { %2382 = vmatprep.mubr.msk.f32.mxu0 %vm285_vm3, %v1354_v23 }
 0xc80   :  { %2383 = vmatmul.mubr.msk.f32.vlgmr.msra.gmra.mrb[12].mxu0 %vm285_vm3, %v1355_v24 }
 0xc81   :  { %2389 = vmatprep.mubr.msk.f32.mxu0 %vm201_vm1, %v1444_v27 }
 0xc83   :  { %2508 = vmatpush3.bf16.xpose.msk.msra.mxu0 %vm3056_vm2, %v2503_v18 }
 0xc8a   :  { %2390 = vmatmul.mubr.msk.f32.vlgmr.msra.gmra.mrb[14].mxu0 %vm201_vm1, %v1446_v28 }
 0xd53   :  { %v3195_v29 = vpop.f32.mrb[12].mxu0 }
 0xd54   :  { %v3197_v30 = vpop.f32.mrb[13].mxu0 }
 0xd5d   :  { %v2391_v31 = vpop.f32.mrb[14].mxu0 }
 0xd5e   :  { %v1531_v32 = vadd.f32 %v2391_v31, %v3072_v25  ;;  %v1525_v33 = vpop.f32.mrb[15].mxu0 }
 0xd5f   :  { %v1526_v34 = vadd.f32 %v1525_v33, %v3074_v26 }
 0xd60   :  { %v1537_v39 = vsel %vm285_vm3, %v1531_v32, -inf }
 0xd61   :  { %1538 = vmax.xlane.f32.xlu0 %v1537_v39  ;;  %v1534_v40 = vsel %vm285_vm3, %v1526_v34, -inf }
 0xd62   :  { %1535 = vmax.xlane.f32.xlu1 %v1534_v40 }
 0xdee   :  { %v1539_v41 = vpop.xlane.xlu0 %1538 }
 0xdef   :  { %vm1541_vm4 = vcmp.gt.f32.partialorder %v1539_v41, -inf  ;;  %v1536_v42 = vpop.xlane.xlu1 %1535 }
 0xdf0   :  { %v1543_v43 = vsel %vm1541_vm4, %v1539_v41, 0.0  ;;  %vm1540_vm5 = vcmp.gt.f32.partialorder %v1536_v42, -inf  ;;  %v1934_v41 = vld [vmem:[#allocation8] sm:$0xff] }
 0xdf1   :  { %v1545_v44 = vsub.f32 %v1531_v32, %v1543_v43  ;;  %v1542_v47 = vsel %vm1540_vm5, %v1536_v42, 0.0  ;;  %v1935_v42 = vld [vmem:[#allocation8 + $0x8] sm:$0xff]  ;;  %v1936_v43 = vld [vmem:[#allocation8 + $0x10] sm:$0xff] }
 0xdf2   :  { %v1544_v48 = vsub.f32 %v1526_v34, %v1542_v47  ;;  %v1937_v47 = vld [vmem:[#allocation8 + $0x18] sm:$0xff] }
 0xdf3   :  { %v1548_v49 = vmul.f32 1.442695, %v1545_v44  ;;  %v2523_v44 = vpack.c.bf16 %v1935_v42, %v1934_v41 }
 0xdf4   :  { %v1546_v50 = vmul.f32 1.442695, %v1544_v48  ;;  %v2527_v48 = vpack.c.bf16 %v1937_v47, %v1936_v43 }
 0xdf5   :  { %2704 = vpow2.f32 %v1548_v49 }
 0xdf6   :  { %2706 = vpow2.f32 %v1546_v50 }
 0xdff   :  { %v2705_v51 = vpop.eup %2704 }
 0xe00   :  { %v2707_v52 = vpop.eup %2706  ;;  %v1553_v53 = vsel %vm285_vm3, %v2705_v51, 0.0 }
 0xe01   :  { %1554 = vadd.xlane.f32.xlu1 %v1553_v53  ;;  %v1550_v54 = vsel %vm285_vm3, %v2707_v52, 0.0 }
 0xe02   :  { %1551 = vadd.xlane.f32.xlu0 %v1550_v54 }
 0xe12   :  { %2647 = vrot.lane.b32.xlu1 %v3049_v13, %s2890_s20 }
 0xe16   :  { %1651 = vrot.lane.b32.xlu1 %v3042_v12, %s2891_s21 }
 0xe18   :  { %2642 = vrot.lane.b32.xlu0 %v3049_v13, %s2892_s4 }
 0xe1c   :  { %1653 = vrot.lane.b32.xlu0 %v3040_v10, %s2891_s21 }
 0xe8e   :  { %v1555_v55 = vpop.xlane.xlu1 %1554 }
 0xe8f   :  { %2708 = vrcp.f32 %v1555_v55  ;;  %v1552_v56 = vpop.xlane.xlu0 %1551  ;;  %vm1557_vm6 = vcmp.gt.f32.partialorder %v1555_v55, 0.0 }
 0xe90   :  { %2710 = vrcp.f32 %v1552_v56  ;;  %vm1556_vm7 = vcmp.gt.f32.partialorder %v1552_v56, 0.0 }
 0xe92   :  { %v2648_v57 = vpop.permute.xlu1 %2647 }
 0xe93   :  { %v2643_v58 = vpop.permute.xlu0 %2642  ;;  %v2650_v61 = vunpack.i.h.bf16 %v2648_v57  ;;  %v2649_v62 = vunpack.i.l.bf16 %v2648_v57 }
 0xe94   :  { %v2645_v63 = vunpack.i.h.bf16 %v2643_v58  ;;  %v2644_v0 = vunpack.i.l.bf16 %v2643_v58 }
 0xe95   :  { %v2513_v2 = vpack.c.bf16 %v2650_v61, %v2649_v62 }
 0xe96   :  { %v2509_v1 = vpack.c.bf16 %v2645_v63, %v2644_v0  ;;  %v1652_v7 = vpop.permute.xlu1 %1651 }
 0xe97   :  { %v1654_v8 = vpop.permute.xlu0 %1653 }
 0xe98   :  { %2510 = vmatprep.subr.bf16.mxu1 %v2509_v1 }
 0xe99   :  { %v2709_v3 = vpop.eup %2708  ;;  %2512 = vmatpush3.bf16.msra.mxu1 %v2509_v1 }
 0xe9a   :  { %v2711_v12 = vpop.eup %2710  ;;  %v1561_v4 = vsel %vm1557_vm6, %v2709_v3, 0.0  ;;  %2515 = vmatprep.subr.msk.bf16.mxu1 %vm3056_vm2, %v2513_v2 }
 0xe9b   :  { %v1560_v10 = vsel %vm1556_vm7, %v2711_v12, 0.0  ;;  %v1563_v6 = vmul.f32 %v2705_v51, %v1561_v4 }
 0xe9c   :  { %v1562_v5 = vmul.f32 %v2707_v52, %v1560_v10 }
 0xe9e   :  { %2396 = vmatprep.mubr.msk.f32.mxu1 %vm285_vm3, %v1562_v5 }
 0xe9f   :  { %2397 = vmatmul.mubr.msk.f32.vlgmr.msra.gmra.mrb[12].mxu1 %vm285_vm3, %v1563_v6 }
 0xea0   :  { %2403 = vmatprep.mubr.msk.f32.mxu1 %vm201_vm1, %v1652_v7 }
 0xea2   :  { %2518 = vmatpush3.bf16.xpose.msk.msra.mxu1 %vm3056_vm2, %v2513_v2 }
 0xea9   :  { %2404 = vmatmul.mubr.msk.f32.vlgmr.msra.gmra.mrb[14].mxu1 %vm201_vm1, %v1654_v8 }
 0xf72   :  { %v2398_v9 = vpop.f32.mrb[12].mxu1 }
 0xf73   :  { %v1642_v11 = vpop.f32.mrb[13].mxu1 }
 0xf7c   :  { %v2405_v16 = vpop.f32.mrb[14].mxu1 }
 0xf7d   :  { %v1739_v18 = vadd.f32 %v2405_v16, %v3072_v25  ;;  %v1733_v19 = vpop.f32.mrb[15].mxu1 }
 0xf7e   :  { %v1734_v20 = vadd.f32 %v1733_v19, %v3074_v26  ;;  %v2036_v19 = vld [vmem:[#allocation10] sm:$0xff] }
 0xf7f   :  { %v1745_v21 = vsel %vm285_vm3, %v1739_v18, -inf }
 0xf80   :  { %1746 = vmax.xlane.f32.xlu0 %v1745_v21  ;;  %v1742_v22 = vsel %vm285_vm3, %v1734_v20, -inf }
 0xf81   :  { %1743 = vmax.xlane.f32.xlu1 %v1742_v22  ;;  %v2038_v22 = vld [vmem:[#allocation10 + $0x10] sm:$0xff] }
0x100d   :  { %v1747_v23 = vpop.xlane.xlu0 %1746 }
0x100e   :  { %vm1749_vm8 = vcmp.gt.f32.partialorder %v1747_v23, -inf  ;;  %v1744_v17 = vpop.xlane.xlu1 %1743 }
0x100f   :  { %v1751_v24 = vsel %vm1749_vm8, %v1747_v23, 0.0  ;;  %vm1748_vm2 = vcmp.gt.f32.partialorder %v1744_v17, -inf  ;;  %v2039_v23 = vld [vmem:[#allocation10 + $0x18] sm:$0xff] }
0x1010   :  { %v1753_v27 = vsub.f32 %v1739_v18, %v1751_v24  ;;  %v1750_v28 = vsel %vm1748_vm2, %v1744_v17, 0.0  ;;  %v2535_v17 = vpack.c.bf16 %v2039_v23, %v2038_v22  ;;  %v2202_v24 = vld [vmem:[%s3276_s5] ss:$0 sm:$0xff] }
0x1011   :  { %v1752_v31 = vsub.f32 %v1734_v20, %v1750_v28  ;;  %v2037_v20 = vld [vmem:[#allocation10 + $0x8] sm:$0xff] }
0x1012   :  { %v1756_v32 = vmul.f32 1.442695, %v1753_v27  ;;  %v2531_v21 = vpack.c.bf16 %v2037_v20, %v2036_v19 }
0x1013   :  { %v1754_v33 = vmul.f32 1.442695, %v1752_v31 }
0x1014   :  { %2712 = vpow2.f32 %v1756_v32  ;;  %2532 = vmatprep.subr.bf16.mxu1 %v2531_v21 }
0x1015   :  { %2714 = vpow2.f32 %v1754_v33  ;;  %2534 = vmatpush3.bf16.msra.mxu1 %v2531_v21 }
0x1016   :  { %2536 = vmatprep.subr.bf16.mxu1 %v2535_v17 }
0x1019   :  { %2538 = vmatpush3.bf16.msra.mxu1 %v2535_v17 }
0x101e   :  { %v2713_v25 = vpop.eup %2712 }
0x101f   :  { %v2715_v26 = vpop.eup %2714  ;;  %v1761_v34 = vsel %vm285_vm3, %v2713_v25, 0.0 }
0x1020   :  { %1762 = vadd.xlane.f32.xlu1 %v1761_v34  ;;  %v1758_v39 = vsel %vm285_vm3, %v2715_v26, 0.0 }
0x1021   :  { %1759 = vadd.xlane.f32.xlu0 %v1758_v39 }
0x1031   :  { %1861 = vrot.lane.b32.xlu1 %v3109_v38, %s2893_s3 }
0x1035   :  { %1863 = vrot.lane.b32.xlu1 %v3107_v37, %s2893_s3 }
0x1037   :  { %2652 = vrot.lane.b32.xlu0 %v3049_v13, %s2894_s12 }
0x1039   :  { %1871 = vrot.lane.b32.xlu1 %v3129_v14, %s2867_s18 }
0x103b   :  { %1869 = vrot.lane.b32.xlu0 %v3131_v15, %s2867_s18 }
0x103d   :  { %1879 = vrot.lane.b32.xlu1 %v3151_v59, %s2895_s6 }
0x103f   :  { %1877 = vrot.lane.b32.xlu0 %v3153_v60, %s2895_s6 }
0x1041   :  { %1887 = vrot.lane.b32.xlu1 %v3173_v45, %s2896_s30 }
0x1043   :  { %1885 = vrot.lane.b32.xlu0 %v3175_v46, %s2896_s30 }
0x1045   :  { %1895 = vrot.lane.b32.xlu1 %v3195_v29, %s2897_s22 }
0x1047   :  { %1893 = vrot.lane.b32.xlu0 %v3197_v30, %s2897_s22 }
0x1049   :  { %1903 = vrot.lane.b32.xlu1 %v2398_v9, %s2898_s23 }
0x104b   :  { %1901 = vrot.lane.b32.xlu0 %v1642_v11, %s2898_s23 }
0x10ad   :  { %v1763_v13 = vpop.xlane.xlu1 %1762 }
0x10ae   :  { %2716 = vrcp.f32 %v1763_v13  ;;  %v1760_v37 = vpop.xlane.xlu0 %1759  ;;  %vm1765_vm9 = vcmp.gt.f32.partialorder %v1763_v13, 0.0 }
0x10af   :  { %2718 = vrcp.f32 %v1760_v37  ;;  %vm1764_vm10 = vcmp.gt.f32.partialorder %v1760_v37, 0.0 }
0x10b1   :  { %v1862_v51 = vpop.permute.xlu1 %1861 }
0x10b2   :  { %v2653_v38 = vpop.permute.xlu0 %2652  ;;  %v1915_v63 = vsel %vm201_vm1, %v3105_v36, %v1862_v51 }
0x10b3   :  { %v2655_v14 = vunpack.i.h.bf16 %v2653_v38  ;;  %v2654_v15 = vunpack.i.l.bf16 %v2653_v38 }
0x10b5   :  { %v2519_v59 = vpack.c.bf16 %v2655_v14, %v2654_v15  ;;  %v1864_v52 = vpop.permute.xlu1 %1863 }
0x10b6   :  { %v1870_v54 = vpop.permute.xlu0 %1869  ;;  %v1916_v1 = vsel %vm201_vm1, %v3103_v35, %v1864_v52 }
0x10b7   :  { %2520 = vmatprep.subr.bf16.mxu0 %v2519_v59  ;;  %v1918_v2 = vsel %vm1917_vm11, %v1915_v63, %v1870_v54 }
0x10b8   :  { %v2717_v60 = vpop.eup %2716  ;;  %2522 = vmatpush3.bf16.msra.mxu0 %v2519_v59  ;;  %v2205_v59 = vld [vmem:[%s3278_s7] ss:$0 sm:$0xff] }
0x10b9   :  { %v2719_v45 = vpop.eup %2718  ;;  %v1769_v46 = vsel %vm1765_vm9, %v2717_v60, 0.0  ;;  %2524 = vmatprep.subr.bf16.mxu0 %v2523_v44  ;;  %v1872_v53 = vpop.permute.xlu1 %1871 }
0x10ba   :  { %v1768_v29 = vsel %vm1764_vm10, %v2719_v45, 0.0  ;;  %v1771_v40 = vmul.f32 %v2713_v25, %v1769_v46  ;;  %v1878_v56 = vpop.permute.xlu0 %1877  ;;  %v1919_v12 = vsel %vm1917_vm11, %v1916_v1, %v1872_v53 }
0x10bb   :  { %v1770_v30 = vmul.f32 %v2715_v26, %v1768_v29  ;;  %v1921_v4 = vsel %vm1920_vm12, %v1918_v2, %v1878_v56 }
0x10bd   :  { %2410 = vmatprep.mubr.msk.f32.mxu0 %vm285_vm3, %v1770_v30  ;;  %v1880_v55 = vpop.permute.xlu1 %1879 }
0x10be   :  { %2411 = vmatmul.mubr.msk.f32.vlgmr.msra.gmra.mrb[16].mxu0 %vm285_vm3, %v1771_v40  ;;  %v1886_v58 = vpop.permute.xlu0 %1885  ;;  %v1922_v10 = vsel %vm1920_vm12, %v1919_v12, %v1880_v55 }
0x10bf   :  { %2526 = vmatpush3.bf16.msra.mxu0 %v2523_v44  ;;  %v1923_v5 = vsel %vm285_vm3, %v1921_v4, %v1886_v58 }
0x10c0   :  { %2528 = vmatprep.subr.bf16.mxu0 %v2527_v48 }
0x10c1   :  { %v1888_v57 = vpop.permute.xlu1 %1887 }
0x10c2   :  { %v1894_v62 = vpop.permute.xlu0 %1893  ;;  %v1924_v6 = vsel %vm285_vm3, %v1922_v10, %v1888_v57 }
0x10c3   :  { %2530 = vmatpush3.bf16.msra.mxu0 %v2527_v48  ;;  %v1926_v7 = vsel %vm1925_vm13, %v1923_v5, %v1894_v62 }
0x10c5   :  { %v1896_v61 = vpop.permute.xlu1 %1895 }
0x10c6   :  { %v1902_v3 = vpop.permute.xlu0 %1901  ;;  %v1927_v9 = vsel %vm1925_vm13, %v1924_v6, %v1896_v61 }
0x10c7   :  { %v1929_v36 = vsel %vm1928_vm14, %v1926_v7, %v1902_v3 }
0x10c9   :  { %v1904_v0 = vpop.permute.xlu1 %1903 }
0x10ca   :  { %v1930_v16 = vsel %vm1928_vm14, %v1927_v9, %v1904_v0 }
0x1191   :  { %v2412_v49 = vpop.f32.mrb[16].mxu0 }
0x1192   :  { %1911 = vrot.lane.b32.xlu1 %v2412_v49, %s2899_s2  ;;  %v1850_v50 = vpop.f32.mrb[17].mxu0 }
0x1193   :  { %1909 = vrot.lane.b32.xlu0 %v1850_v50, %s2899_s2 }
0x1204   :  { %v1912_v8 = vpop.permute.xlu1 %1911 }
0x1205   :  { %v1910_v11 = vpop.permute.xlu0 %1909  ;;  %v1933_v35 = vsel %vm1931_vm15, %v1930_v16, %v1912_v8 }
0x1206   :  { %v1932_v18 = vsel %vm1931_vm15, %v1929_v36, %v1910_v11 }
0x1207   :  { %2421 = vmatprep.mubr.msk.f32.mxu0 %vm111_vm0, %v1932_v18 }
0x1208   :  { %2422 = vmatmul.mubr.msk.f32.vlgmr.msra.gmra.mrb[18].mxu0 %vm111_vm0, %v1933_v35 }
0x12db   :  { %v2423_v27 = vpop.f32.mrb[18].mxu0 }
0x12dc   :  { %v2023_v28 = vadd.f32 %v2423_v27, %v2202_v24  ;;  %v2017_v31 = vpop.f32.mrb[19].mxu0 }
0x12dd   :  { %v2018_v32 = vadd.f32 %v2202_v24, %v2017_v31 }
0x12de   :  { %v2029_v33 = vmul.f32 0.70710677, %v2023_v28  ;;  %v2027_v38 = vmul.f32 0.5, %v2023_v28 }
0x12df   :  { %v2028_v25 = vmul.f32 0.70710677, %v2018_v32  ;;  %v2026_v13 = vmul.f32 0.5, %v2018_v32 }
0x12e0   :  { %2720 = verf.f32 %v2029_v33 }
0x12e1   :  { %2722 = verf.f32 %v2028_v25 }
0x12ea   :  { %v2721_v26 = vpop.eup %2720 }
0x12eb   :  { %v2723_v34 = vpop.eup %2722  ;;  %v2033_v39 = vadd.f32 1.0, %v2721_v26 }
0x12ec   :  { %v2032_v37 = vadd.f32 1.0, %v2723_v34 }
0x12ed   :  { %v2035_v15 = vmul.f32 %v2033_v39, %v2027_v38 }
0x12ee   :  { %v2034_v14 = vmul.f32 %v2032_v37, %v2026_v13 }
0x12f0   :  { %2432 = vmatprep.mubr.msk.f32.mxu1 %vm111_vm0, %v2034_v14 }
0x12f1   :  { %2433 = vmatmul.mubr.msk.f32.vlgmr.msra.gmra.mrb[16].mxu1 %vm111_vm0, %v2035_v15 }
0x13c4   :  { %v2434_v60 = vpop.f32.mrb[16].mxu1 }
0x13c5   :  { %v2125_v45 = vadd.f32 %v2434_v60, %v2205_v59  ;;  %v2119_v46 = vpop.f32.mrb[17].mxu1 }
0x13c6   :  { %v2120_v29 = vadd.f32 %v2205_v59, %v2119_v46 }
0x13c7   :  { %v2129_v30 = vadd.f32 %v2125_v45, %v1933_v35 }
0x13c8   :  { %v2128_v40 = vadd.f32 %v2120_v29, %v1932_v18 }
0x13c9   :  { %2131 = vst.msk [vmem:[#allocation11 + $0x8] sm:$0xff] %vm111_vm0, %v2129_v30 }
0x13ca   :  { %2130 = vst.msk [vmem:[#allocation11] sm:$0xff] %vm111_vm0, %v2128_v40 }
0x13cb   :  { %2845 = shalt.err (!%p2842_p2)
}
0x13cc   :  { %s2846_s0 = scalar_lea.hbm %s3279_s8, 256 }
0x13cd   :  { %p2847_p3 = scmp.ne.s32.totalorder %s3279_s8, %s2846_s0  ;;  %p2850_p4 = scmp.lt.u32.totalorder %s2846_s0, %s3279_s8 }
0x13cf   :  { %p2852_p5 = pnand %p2850_p4, %p2847_p3 }
0x13d1   :  { %2855 = shalt.err (!%p2852_p5)
}
0x13d2   :  { %2143 = dma.vmem_to_hbm [thread:$0]  %s2138_s29, 256, %s3279_s8, [#allocation4], %s2866_s17, %s2866_s17, %s2867_s18  }
0x13d3   :  { %2862 = dma.done.wait [#allocation4], 256  }
0x13d4   :  { %2863 = vsyncadd [#allocation4], 4294967040 }
0x13d5   :  { %2147 = vsyncpa [#allocation3], 1 }
0x13d6   :  { %2148 = vsyncpa [#allocation6], 1 }
0x13d7   :  { %2149 = vsyncpa [#allocation9], 1 }
0x13d8   :  { %2150 = vsyncpa [#allocation4], 1 }

</bundles_post_ra>
